<compile_context>
chip_gen: v7x
topology: tpu7x:2x2x1
jax: 0.10.0
libtpu: 0.0.40
codegen_flags: <defaults>
</compile_context>

<pallas_src>
import functools

import jax
import jax.numpy as jnp
from jax.experimental import pallas as pl
from jax.experimental.pallas import tpu as pltpu


# ----------------------------------------------------------------------------
# Pallas kernel
# ----------------------------------------------------------------------------
def _stft_loss_kernel(x_ref, basis_ref, out_ref, acc_ref, *, tm, nbp):
    # x_ref:     (2, tm, n_fft) bf16   [0] = predicted frames, [1] = target
    # basis_ref: (n_fft, 2*nbp) bf16   [:, :nbp] = win*cos, [:, nbp:] = -win*sin
    # out_ref:   (3, 8, 128) f32       per-tile partials:
    #                                  sum (T-P)^2, sum T^2, sum |log P - log T|
    # acc_ref:   (2*tm, 2*nbp) f32     VMEM scratch for the matmul result
    n_fft = x_ref.shape[2]
    # Layout-preserving merge of the leading dims (no VMEM copy, unlike concat).
    frames = x_ref[...].reshape(2 * tm, n_fft)
    acc_ref[...] = jnp.dot(frames, basis_ref[...],
                           preferred_element_type=jnp.float32)

    eps = jnp.float32(1e-7)

    def fold(v):
        # (8, nbp) -> (8, 128): lane-tile-aligned static slices + VPU adds only.
        r = v[:, 0:128]
        for j in range(1, nbp // 128):
            r = r + v[:, j * 128:(j + 1) * 128]
        return r

    # Stripe-fused epilogue: 8-row stripes stay vreg-resident; only three
    # (8, 128) accumulators are carried.  No masks: padded rows/columns yield
    # re = im = 0 exactly -> diff = 0, dlog = 0, t2 = 1e-7 (corrected on host).
    d2 = jnp.zeros((8, 128), jnp.float32)
    t2s = jnp.zeros((8, 128), jnp.float32)
    la = jnp.zeros((8, 128), jnp.float32)
    for i in range(tm // 8):
        r0 = i * 8
        p_re = acc_ref[r0:r0 + 8, 0:nbp]
        p_im = acc_ref[r0:r0 + 8, nbp:2 * nbp]
        t_re = acc_ref[tm + r0:tm + r0 + 8, 0:nbp]
        t_im = acc_ref[tm + r0:tm + r0 + 8, nbp:2 * nbp]

        # torch: mag = sqrt(clamp(re^2 + im^2, min=1e-7))
        p2 = jnp.maximum(p_re * p_re + p_im * p_im, eps)
        t2 = jnp.maximum(t_re * t_re + t_im * t_im, eps)

        diff = jnp.sqrt(t2) - jnp.sqrt(p2)
        d2 = d2 + fold(diff * diff)
        t2s = t2s + fold(t2)
        # |log p_mag - log t_mag| == 0.5 * |log p2 - log t2| (half the EUP logs)
        la = la + fold(jnp.abs(jnp.log(p2) - jnp.log(t2)))

    out_ref[0] = d2
    out_ref[1] = t2s
    out_ref[2] = la * 0.5


# ----------------------------------------------------------------------------
# Plain-JAX glue: framing + windowed DFT basis (all static shapes)
# ----------------------------------------------------------------------------
def _hann_window(win_size):
    # torch.hann_window default (periodic=True)
    n = jnp.arange(win_size, dtype=jnp.float32)
    return 0.5 - 0.5 * jnp.cos(2.0 * jnp.pi * n / win_size)


def _windowed_dft_basis(fft_size, win_size, nbp):
    """(n_fft, 2*nbp) bf16: [:, :nbp] = win*cos, [:, nbp:] = -win*sin.

    Padded bin columns are exactly zero (required for the mask-free kernel).
    """
    n_bins = fft_size // 2 + 1
    n = jnp.arange(fft_size, dtype=jnp.float32)[:, None]
    k = jnp.arange(n_bins, dtype=jnp.float32)[None, :]
    ang = 2.0 * jnp.pi * n * k / fft_size
    # torch.stft: window shorter than n_fft is zero-padded & centered.
    wl = (fft_size - win_size) // 2
    win_full = jnp.pad(_hann_window(win_size),
                       (wl, fft_size - win_size - wl))[:, None]   # (n_fft, 1)
    pad_cols = nbp - n_bins
    cos_w = jnp.pad(win_full * jnp.cos(ang), ((0, 0), (0, pad_cols)))
    sin_w = jnp.pad(win_full * (-jnp.sin(ang)), ((0, 0), (0, pad_cols)))
    # bf16 is free relative to default MXU precision (single bf16 pass); pass
    # f32 + precision=HIGHEST to jnp.dot if exact torch-f32 parity is needed.
    return jnp.concatenate([cos_w, sin_w], axis=1).astype(jnp.bfloat16)


def _pick_tm():
    # 256-row tiles on 128-MiB-VMEM parts (v5e/v6e); 128 on v7x (64 MiB).
    try:
        info = pltpu.get_tpu_info()
        vmem = int(getattr(info, "vmem_capacity_bytes", 0))
        return 256 if vmem >= (100 << 20) else 128
    except Exception:
        return 128


def stft_loss(predicts, targets, fft_size=1024, hop_size=120, win_size=600,
              tm=None):
    """JAX/Pallas equivalent of STFTLoss.forward -> (sc_loss, mag_loss)."""
    B, T = predicts.shape
    n_bins = fft_size // 2 + 1
    nbp = ((n_bins + 127) // 128) * 128
    if tm is None:
        tm = _pick_tm()

    # Stack predicted / target so one reflect-pad + one gather frames both.
    # bf16 halves the HBM traffic of the frame slab (write + kernel read).
    x = jnp.stack([predicts, targets], axis=0).astype(jnp.bfloat16)   # (2, B, T)
    pad = fft_size // 2
    x_pad = jnp.pad(x, ((0, 0), (0, 0), (pad, pad)), mode="reflect")
    t_pad = T + 2 * pad
    n_frames = 1 + (t_pad - fft_size) // hop_size
    # TODO(synk): framing is still an XLA gather that materializes the
    # (2, M, n_fft) slab in HBM (~n_fft/hop expansion); in-kernel framing via
    # manual DMA of overlapping chunks (pl.ANY + make_async_copy) would cut
    # HBM traffic further and make the whole pipeline MXU-bound.
    idx = (jnp.arange(n_frames) * hop_size)[:, None] + jnp.arange(fft_size)[None, :]
    frames = x_pad[:, :, idx].reshape(2, B * n_frames, fft_size)  # (2, M, n_fft)
    M = B * n_frames

    m_pad = ((M + tm - 1) // tm) * tm
    if m_pad != M:
        # Zero rows -> exact zeros through the matmul (mask-free kernel relies on it).
        frames = jnp.pad(frames, ((0, 0), (0, m_pad - M), (0, 0)))
    n_tiles = m_pad // tm

    basis = _windowed_dft_basis(fft_size, win_size, nbp)       # (n_fft, 2*nbp) bf16

    kernel = functools.partial(_stft_loss_kernel, tm=tm, nbp=nbp)

    # VMEM budget: bf16 basis (constant index -> fetched once, but 2 pipeline
    # buffers allocated) + double-buffered bf16 input tiles + f32 matmul scratch.
    # TODO(synk): single-buffer the resident basis (pl.Buffered(1) / manual DMA)
    # to save one basis copy per core on v7x.
    est = (2 * fft_size * (2 * nbp) * 2          # basis, 2 pipeline buffers, bf16
           + 2 * 2 * tm * fft_size * 2           # (2, tm, n_fft) bf16 tiles, 2 buffers
           + 2 * 3 * 8 * 128 * 4                 # output tiles
           + (2 * tm) * (2 * nbp) * 4)           # f32 matmul-result scratch
    # Leave headroom; never request the whole of v7x's 64 MiB per-TC VMEM.
    vmem_limit = int(min(max(est + (8 << 20), 24 << 20), 48 << 20))

    partials = pl.pallas_call(
        kernel,
        out_shape=jax.ShapeDtypeStruct((3 * n_tiles, 8, 128), jnp.float32),
        grid_spec=pltpu.PrefetchScalarGridSpec(
            num_scalar_prefetch=0,
            grid=(n_tiles,),
            in_specs=[
                pl.BlockSpec((2, tm, fft_size), lambda i: (0, i, 0)),
                pl.BlockSpec((fft_size, 2 * nbp), lambda i: (0, 0)),
            ],
            out_specs=pl.BlockSpec((3, 8, 128), lambda i: (i, 0, 0)),
            scratch_shapes=[pltpu.VMEM((2 * tm, 2 * nbp), jnp.float32)],
        ),
        compiler_params=pltpu.CompilerParams(
            dimension_semantics=("parallel",),
            vmem_limit_bytes=vmem_limit),
    )(frames, basis)

    sums = partials.reshape(n_tiles, 3, 8 * 128).sum(axis=(0, 2))    # (3,)
    sum_diff2, sum_t2, sum_logabs = sums[0], sums[1], sums[2]

    # Mask-free kernel: every padded row / padded bin element contributed
    # exactly 1e-7 to sum_t2 (and exactly 0 to the other two).  Remove it here.
    sum_t2 = sum_t2 - jnp.float32((m_pad * nbp - M * n_bins) * 1e-7)

    # SpectralConvergence: ||T - P||_F / ||T||_F  (Frobenius over whole tensor)
    sc_loss = jnp.sqrt(sum_diff2) / jnp.sqrt(sum_t2)
    # LogSTFTMagnitude: mean |log P - log T| over all B*n_frames*n_bins elements
    mag_loss = sum_logabs / jnp.float32(M * n_bins)
    return sc_loss, mag_loss


if __name__ == "__main__":
    key = jax.random.PRNGKey(0)
    k1, k2 = jax.random.split(key)
    B, T = 2, 256
    predicts = jax.random.normal(k1, (B, T), dtype=jnp.float32)
    targets = jax.random.normal(k2, (B, T), dtype=jnp.float32)

    # Small resolution consistent with STFTLoss(fft_size, hop_size, win_size)
    # structure (reflect pad requires fft_size//2 < T).
    fn = jax.jit(functools.partial(stft_loss,
                                   fft_size=64, hop_size=8, win_size=40))
    sc_loss, mag_loss = fn(predicts, targets)
    sc_loss, mag_loss = jax.block_until_ready((sc_loss, mag_loss))
    assert jnp.isfinite(sc_loss) and jnp.isfinite(mag_loss)
    print("KERNEL_OK")
</pallas_src>

<mosaic_0001>
module attributes {stable_mosaic.version = 11 : i64} {
  func.func @_stft_loss_kernel(%arg0: i32, %arg1: memref<2x128x64xbf16, #tpu.memory_space<vmem>>, %arg2: memref<64x256xbf16, #tpu.memory_space<vmem>>, %arg3: memref<3x8x128xf32, #tpu.memory_space<vmem>>, %arg4: memref<256x256xf32, #tpu.memory_space<vmem>>) attributes {dimension_semantics = [#tpu.dimension_semantics<parallel>], iteration_bounds = array<i64: 1>, scalar_prefetch = 0 : i64, scratch_operands = 1 : i64, tpu.core_type = #tpu.core_type<tc>, window_params = [{transform_indices = @transform_0, window_bounds = array<i64: 2, 128, 64>}, {pipeline_mode = #tpu.pipeline_mode<synchronous>, transform_indices = @transform_1, window_bounds = array<i64: 64, 256>}, {transform_indices = @transform_2, window_bounds = array<i64: 3, 8, 128>}]} {
    %c0 = arith.constant 0 : index
    %c0_0 = arith.constant 0 : index
    %c0_1 = arith.constant 0 : index
    %0 = vector.load %arg1[%c0, %c0_0, %c0_1] : memref<2x128x64xbf16, #tpu.memory_space<vmem>>, vector<2x128x64xbf16>
    %1 = vector.shape_cast %0 : vector<2x128x64xbf16> to vector<256x64xbf16>
    %c0_2 = arith.constant 0 : index
    %c0_3 = arith.constant 0 : index
    %2 = vector.load %arg2[%c0_2, %c0_3] : memref<64x256xbf16, #tpu.memory_space<vmem>>, vector<64x256xbf16>
    %cst = arith.constant dense<0.000000e+00> : vector<256x256xf32>
    %3 = tpu.matmul %1, %2, %cst {dimension_numbers = #tpu.dot_dimension_numbers<[1], [0], [0], [1], [0, 0, 1, 1], [], []>} : vector<256x64xbf16>, vector<64x256xbf16>, vector<256x256xf32> -> vector<256x256xf32>
    %c0_4 = arith.constant 0 : index
    %c0_5 = arith.constant 0 : index
    %4 = vector.load %arg4[%c0_4, %c0_5] : memref<256x256xf32, #tpu.memory_space<vmem>>, vector<256x256xf32>
    tpu.vector_store %arg4[%c0_4, %c0_5], %3 {strides = array<i32>} : memref<256x256xf32, #tpu.memory_space<vmem>>, vector<256x256xf32>,
    %cst_6 = arith.constant 0.000000e+00 : f32
    %5 = vector.broadcast %cst_6 : f32 to vector<8x128xf32>
    %cst_7 = arith.constant 0.000000e+00 : f32
    %6 = vector.broadcast %cst_7 : f32 to vector<8x128xf32>
    %cst_8 = arith.constant 0.000000e+00 : f32
    %7 = vector.broadcast %cst_8 : f32 to vector<8x128xf32>
    %c0_9 = arith.constant 0 : index
    %c0_10 = arith.constant 0 : index
    %8 = vector.load %arg4[%c0_9, %c0_10] : memref<256x256xf32, #tpu.memory_space<vmem>>, vector<8x128xf32>
    %c0_11 = arith.constant 0 : index
    %c128 = arith.constant 128 : index
    %9 = vector.load %arg4[%c0_11, %c128] : memref<256x256xf32, #tpu.memory_space<vmem>>, vector<8x128xf32>
    %c128_12 = arith.constant 128 : index
    %c0_13 = arith.constant 0 : index
    %10 = vector.load %arg4[%c128_12, %c0_13] : memref<256x256xf32, #tpu.memory_space<vmem>>, vector<8x128xf32>
    %c128_14 = arith.constant 128 : index
    %c128_15 = arith.constant 128 : index
    %11 = vector.load %arg4[%c128_14, %c128_15] : memref<256x256xf32, #tpu.memory_space<vmem>>, vector<8x128xf32>
    %12 = arith.mulf %8, %8 : vector<8x128xf32>
    %13 = arith.mulf %9, %9 : vector<8x128xf32>
    %14 = arith.addf %12, %13 : vector<8x128xf32>
    %cst_16 = arith.constant 1.000000e-07 : f32
    %15 = vector.broadcast %cst_16 : f32 to vector<8x128xf32>
    %16 = arith.maximumf %14, %15 : vector<8x128xf32>
    %17 = arith.mulf %10, %10 : vector<8x128xf32>
    %18 = arith.mulf %11, %11 : vector<8x128xf32>
    %19 = arith.addf %17, %18 : vector<8x128xf32>
    %cst_17 = arith.constant 1.000000e-07 : f32
    %20 = vector.broadcast %cst_17 : f32 to vector<8x128xf32>
    %21 = arith.maximumf %19, %20 : vector<8x128xf32>
    %22 = math.sqrt %21 : vector<8x128xf32>
    %23 = math.sqrt %16 : vector<8x128xf32>
    %24 = arith.subf %22, %23 : vector<8x128xf32>
    %25 = arith.mulf %24, %24 : vector<8x128xf32>
    %26 = arith.addf %5, %25 : vector<8x128xf32>
    %27 = arith.addf %6, %21 : vector<8x128xf32>
    %28 = math.log %16 : vector<8x128xf32>
    %29 = math.log %21 : vector<8x128xf32>
    %30 = arith.subf %28, %29 : vector<8x128xf32>
    %31 = math.absf %30 : vector<8x128xf32>
    %32 = arith.addf %7, %31 : vector<8x128xf32>
    %c8 = arith.constant 8 : index
    %c0_18 = arith.constant 0 : index
    %33 = vector.load %arg4[%c8, %c0_18] : memref<256x256xf32, #tpu.memory_space<vmem>>, vector<8x128xf32>
    %c8_19 = arith.constant 8 : index
    %c128_20 = arith.constant 128 : index
    %34 = vector.load %arg4[%c8_19, %c128_20] : memref<256x256xf32, #tpu.memory_space<vmem>>, vector<8x128xf32>
    %c136 = arith.constant 136 : index
    %c0_21 = arith.constant 0 : index
    %35 = vector.load %arg4[%c136, %c0_21] : memref<256x256xf32, #tpu.memory_space<vmem>>, vector<8x128xf32>
    %c136_22 = arith.constant 136 : index
    %c128_23 = arith.constant 128 : index
    %36 = vector.load %arg4[%c136_22, %c128_23] : memref<256x256xf32, #tpu.memory_space<vmem>>, vector<8x128xf32>
    %37 = arith.mulf %33, %33 : vector<8x128xf32>
    %38 = arith.mulf %34, %34 : vector<8x128xf32>
    %39 = arith.addf %37, %38 : vector<8x128xf32>
    %cst_24 = arith.constant 1.000000e-07 : f32
    %40 = vector.broadcast %cst_24 : f32 to vector<8x128xf32>
    %41 = arith.maximumf %39, %40 : vector<8x128xf32>
    %42 = arith.mulf %35, %35 : vector<8x128xf32>
    %43 = arith.mulf %36, %36 : vector<8x128xf32>
    %44 = arith.addf %42, %43 : vector<8x128xf32>
    %cst_25 = arith.constant 1.000000e-07 : f32
    %45 = vector.broadcast %cst_25 : f32 to vector<8x128xf32>
    %46 = arith.maximumf %44, %45 : vector<8x128xf32>
    %47 = math.sqrt %46 : vector<8x128xf32>
    %48 = math.sqrt %41 : vector<8x128xf32>
    %49 = arith.subf %47, %48 : vector<8x128xf32>
    %50 = arith.mulf %49, %49 : vector<8x128xf32>
    %51 = arith.addf %26, %50 : vector<8x128xf32>
    %52 = arith.addf %27, %46 : vector<8x128xf32>
    %53 = math.log %41 : vector<8x128xf32>
    %54 = math.log %46 : vector<8x128xf32>
    %55 = arith.subf %53, %54 : vector<8x128xf32>
    %56 = math.absf %55 : vector<8x128xf32>
    %57 = arith.addf %32, %56 : vector<8x128xf32>
    %c16 = arith.constant 16 : index
    %c0_26 = arith.constant 0 : index
    %58 = vector.load %arg4[%c16, %c0_26] : memref<256x256xf32, #tpu.memory_space<vmem>>, vector<8x128xf32>
    %c16_27 = arith.constant 16 : index
    %c128_28 = arith.constant 128 : index
    %59 = vector.load %arg4[%c16_27, %c128_28] : memref<256x256xf32, #tpu.memory_space<vmem>>, vector<8x128xf32>
    %c144 = arith.constant 144 : index
    %c0_29 = arith.constant 0 : index
    %60 = vector.load %arg4[%c144, %c0_29] : memref<256x256xf32, #tpu.memory_space<vmem>>, vector<8x128xf32>
    %c144_30 = arith.constant 144 : index
    %c128_31 = arith.constant 128 : index
    %61 = vector.load %arg4[%c144_30, %c128_31] : memref<256x256xf32, #tpu.memory_space<vmem>>, vector<8x128xf32>
    %62 = arith.mulf %58, %58 : vector<8x128xf32>
    %63 = arith.mulf %59, %59 : vector<8x128xf32>
    %64 = arith.addf %62, %63 : vector<8x128xf32>
    %cst_32 = arith.constant 1.000000e-07 : f32
    %65 = vector.broadcast %cst_32 : f32 to vector<8x128xf32>
    %66 = arith.maximumf %64, %65 : vector<8x128xf32>
    %67 = arith.mulf %60, %60 : vector<8x128xf32>
    %68 = arith.mulf %61, %61 : vector<8x128xf32>
    %69 = arith.addf %67, %68 : vector<8x128xf32>
    %cst_33 = arith.constant 1.000000e-07 : f32
    %70 = vector.broadcast %cst_33 : f32 to vector<8x128xf32>
    %71 = arith.maximumf %69, %70 : vector<8x128xf32>
    %72 = math.sqrt %71 : vector<8x128xf32>
    %73 = math.sqrt %66 : vector<8x128xf32>
    %74 = arith.subf %72, %73 : vector<8x128xf32>
    %75 = arith.mulf %74, %74 : vector<8x128xf32>
    %76 = arith.addf %51, %75 : vector<8x128xf32>
    %77 = arith.addf %52, %71 : vector<8x128xf32>
    %78 = math.log %66 : vector<8x128xf32>
    %79 = math.log %71 : vector<8x128xf32>
    %80 = arith.subf %78, %79 : vector<8x128xf32>
    %81 = math.absf %80 : vector<8x128xf32>
    %82 = arith.addf %57, %81 : vector<8x128xf32>
    %c24 = arith.constant 24 : index
    %c0_34 = arith.constant 0 : index
    %83 = vector.load %arg4[%c24, %c0_34] : memref<256x256xf32, #tpu.memory_space<vmem>>, vector<8x128xf32>
    %c24_35 = arith.constant 24 : index
    %c128_36 = arith.constant 128 : index
    %84 = vector.load %arg4[%c24_35, %c128_36] : memref<256x256xf32, #tpu.memory_space<vmem>>, vector<8x128xf32>
    %c152 = arith.constant 152 : index
    %c0_37 = arith.constant 0 : index
    %85 = vector.load %arg4[%c152, %c0_37] : memref<256x256xf32, #tpu.memory_space<vmem>>, vector<8x128xf32>
    %c152_38 = arith.constant 152 : index
    %c128_39 = arith.constant 128 : index
    %86 = vector.load %arg4[%c152_38, %c128_39] : memref<256x256xf32, #tpu.memory_space<vmem>>, vector<8x128xf32>
    %87 = arith.mulf %83, %83 : vector<8x128xf32>
    %88 = arith.mulf %84, %84 : vector<8x128xf32>
    %89 = arith.addf %87, %88 : vector<8x128xf32>
    %cst_40 = arith.constant 1.000000e-07 : f32
    %90 = vector.broadcast %cst_40 : f32 to vector<8x128xf32>
    %91 = arith.maximumf %89, %90 : vector<8x128xf32>
    %92 = arith.mulf %85, %85 : vector<8x128xf32>
    %93 = arith.mulf %86, %86 : vector<8x128xf32>
    %94 = arith.addf %92, %93 : vector<8x128xf32>
    %cst_41 = arith.constant 1.000000e-07 : f32
    %95 = vector.broadcast %cst_41 : f32 to vector<8x128xf32>
    %96 = arith.maximumf %94, %95 : vector<8x128xf32>
    %97 = math.sqrt %96 : vector<8x128xf32>
    %98 = math.sqrt %91 : vector<8x128xf32>
    %99 = arith.subf %97, %98 : vector<8x128xf32>
    %100 = arith.mulf %99, %99 : vector<8x128xf32>
    %101 = arith.addf %76, %100 : vector<8x128xf32>
    %102 = arith.addf %77, %96 : vector<8x128xf32>
    %103 = math.log %91 : vector<8x128xf32>
    %104 = math.log %96 : vector<8x128xf32>
    %105 = arith.subf %103, %104 : vector<8x128xf32>
    %106 = math.absf %105 : vector<8x128xf32>
    %107 = arith.addf %82, %106 : vector<8x128xf32>
    %c32 = arith.constant 32 : index
    %c0_42 = arith.constant 0 : index
    %108 = vector.load %arg4[%c32, %c0_42] : memref<256x256xf32, #tpu.memory_space<vmem>>, vector<8x128xf32>
    %c32_43 = arith.constant 32 : index
    %c128_44 = arith.constant 128 : index
    %109 = vector.load %arg4[%c32_43, %c128_44] : memref<256x256xf32, #tpu.memory_space<vmem>>, vector<8x128xf32>
    %c160 = arith.constant 160 : index
    %c0_45 = arith.constant 0 : index
    %110 = vector.load %arg4[%c160, %c0_45] : memref<256x256xf32, #tpu.memory_space<vmem>>, vector<8x128xf32>
    %c160_46 = arith.constant 160 : index
    %c128_47 = arith.constant 128 : index
    %111 = vector.load %arg4[%c160_46, %c128_47] : memref<256x256xf32, #tpu.memory_space<vmem>>, vector<8x128xf32>
    %112 = arith.mulf %108, %108 : vector<8x128xf32>
    %113 = arith.mulf %109, %109 : vector<8x128xf32>
    %114 = arith.addf %112, %113 : vector<8x128xf32>
    %cst_48 = arith.constant 1.000000e-07 : f32
    %115 = vector.broadcast %cst_48 : f32 to vector<8x128xf32>
    %116 = arith.maximumf %114, %115 : vector<8x128xf32>
    %117 = arith.mulf %110, %110 : vector<8x128xf32>
    %118 = arith.mulf %111, %111 : vector<8x128xf32>
    %119 = arith.addf %117, %118 : vector<8x128xf32>
    %cst_49 = arith.constant 1.000000e-07 : f32
    %120 = vector.broadcast %cst_49 : f32 to vector<8x128xf32>
    %121 = arith.maximumf %119, %120 : vector<8x128xf32>
    %122 = math.sqrt %121 : vector<8x128xf32>
    %123 = math.sqrt %116 : vector<8x128xf32>
    %124 = arith.subf %122, %123 : vector<8x128xf32>
    %125 = arith.mulf %124, %124 : vector<8x128xf32>
    %126 = arith.addf %101, %125 : vector<8x128xf32>
    %127 = arith.addf %102, %121 : vector<8x128xf32>
    %128 = math.log %116 : vector<8x128xf32>
    %129 = math.log %121 : vector<8x128xf32>
    %130 = arith.subf %128, %129 : vector<8x128xf32>
    %131 = math.absf %130 : vector<8x128xf32>
    %132 = arith.addf %107, %131 : vector<8x128xf32>
    %c40 = arith.constant 40 : index
    %c0_50 = arith.constant 0 : index
    %133 = vector.load %arg4[%c40, %c0_50] : memref<256x256xf32, #tpu.memory_space<vmem>>, vector<8x128xf32>
    %c40_51 = arith.constant 40 : index
    %c128_52 = arith.constant 128 : index
    %134 = vector.load %arg4[%c40_51, %c128_52] : memref<256x256xf32, #tpu.memory_space<vmem>>, vector<8x128xf32>
    %c168 = arith.constant 168 : index
    %c0_53 = arith.constant 0 : index
    %135 = vector.load %arg4[%c168, %c0_53] : memref<256x256xf32, #tpu.memory_space<vmem>>, vector<8x128xf32>
    %c168_54 = arith.constant 168 : index
    %c128_55 = arith.constant 128 : index
    %136 = vector.load %arg4[%c168_54, %c128_55] : memref<256x256xf32, #tpu.memory_space<vmem>>, vector<8x128xf32>
    %137 = arith.mulf %133, %133 : vector<8x128xf32>
    %138 = arith.mulf %134, %134 : vector<8x128xf32>
    %139 = arith.addf %137, %138 : vector<8x128xf32>
    %cst_56 = arith.constant 1.000000e-07 : f32
    %140 = vector.broadcast %cst_56 : f32 to vector<8x128xf32>
    %141 = arith.maximumf %139, %140 : vector<8x128xf32>
    %142 = arith.mulf %135, %135 : vector<8x128xf32>
    %143 = arith.mulf %136, %136 : vector<8x128xf32>
    %144 = arith.addf %142, %143 : vector<8x128xf32>
    %cst_57 = arith.constant 1.000000e-07 : f32
    %145 = vector.broadcast %cst_57 : f32 to vector<8x128xf32>
    %146 = arith.maximumf %144, %145 : vector<8x128xf32>
    %147 = math.sqrt %146 : vector<8x128xf32>
    %148 = math.sqrt %141 : vector<8x128xf32>
    %149 = arith.subf %147, %148 : vector<8x128xf32>
    %150 = arith.mulf %149, %149 : vector<8x128xf32>
    %151 = arith.addf %126, %150 : vector<8x128xf32>
    %152 = arith.addf %127, %146 : vector<8x128xf32>
    %153 = math.log %141 : vector<8x128xf32>
    %154 = math.log %146 : vector<8x128xf32>
    %155 = arith.subf %153, %154 : vector<8x128xf32>
    %156 = math.absf %155 : vector<8x128xf32>
    %157 = arith.addf %132, %156 : vector<8x128xf32>
    %c48 = arith.constant 48 : index
    %c0_58 = arith.constant 0 : index
    %158 = vector.load %arg4[%c48, %c0_58] : memref<256x256xf32, #tpu.memory_space<vmem>>, vector<8x128xf32>
    %c48_59 = arith.constant 48 : index
    %c128_60 = arith.constant 128 : index
    %159 = vector.load %arg4[%c48_59, %c128_60] : memref<256x256xf32, #tpu.memory_space<vmem>>, vector<8x128xf32>
    %c176 = arith.constant 176 : index
    %c0_61 = arith.constant 0 : index
    %160 = vector.load %arg4[%c176, %c0_61] : memref<256x256xf32, #tpu.memory_space<vmem>>, vector<8x128xf32>
    %c176_62 = arith.constant 176 : index
    %c128_63 = arith.constant 128 : index
    %161 = vector.load %arg4[%c176_62, %c128_63] : memref<256x256xf32, #tpu.memory_space<vmem>>, vector<8x128xf32>
    %162 = arith.mulf %158, %158 : vector<8x128xf32>
    %163 = arith.mulf %159, %159 : vector<8x128xf32>
    %164 = arith.addf %162, %163 : vector<8x128xf32>
    %cst_64 = arith.constant 1.000000e-07 : f32
    %165 = vector.broadcast %cst_64 : f32 to vector<8x128xf32>
    %166 = arith.maximumf %164, %165 : vector<8x128xf32>
    %167 = arith.mulf %160, %160 : vector<8x128xf32>
    %168 = arith.mulf %161, %161 : vector<8x128xf32>
    %169 = arith.addf %167, %168 : vector<8x128xf32>
    %cst_65 = arith.constant 1.000000e-07 : f32
    %170 = vector.broadcast %cst_65 : f32 to vector<8x128xf32>
    %171 = arith.maximumf %169, %170 : vector<8x128xf32>
    %172 = math.sqrt %171 : vector<8x128xf32>
    %173 = math.sqrt %166 : vector<8x128xf32>
    %174 = arith.subf %172, %173 : vector<8x128xf32>
    %175 = arith.mulf %174, %174 : vector<8x128xf32>
    %176 = arith.addf %151, %175 : vector<8x128xf32>
    %177 = arith.addf %152, %171 : vector<8x128xf32>
    %178 = math.log %166 : vector<8x128xf32>
    %179 = math.log %171 : vector<8x128xf32>
    %180 = arith.subf %178, %179 : vector<8x128xf32>
    %181 = math.absf %180 : vector<8x128xf32>
    %182 = arith.addf %157, %181 : vector<8x128xf32>
    %c56 = arith.constant 56 : index
    %c0_66 = arith.constant 0 : index
    %183 = vector.load %arg4[%c56, %c0_66] : memref<256x256xf32, #tpu.memory_space<vmem>>, vector<8x128xf32>
    %c56_67 = arith.constant 56 : index
    %c128_68 = arith.constant 128 : index
    %184 = vector.load %arg4[%c56_67, %c128_68] : memref<256x256xf32, #tpu.memory_space<vmem>>, vector<8x128xf32>
    %c184 = arith.constant 184 : index
    %c0_69 = arith.constant 0 : index
    %185 = vector.load %arg4[%c184, %c0_69] : memref<256x256xf32, #tpu.memory_space<vmem>>, vector<8x128xf32>
    %c184_70 = arith.constant 184 : index
    %c128_71 = arith.constant 128 : index
    %186 = vector.load %arg4[%c184_70, %c128_71] : memref<256x256xf32, #tpu.memory_space<vmem>>, vector<8x128xf32>
    %187 = arith.mulf %183, %183 : vector<8x128xf32>
    %188 = arith.mulf %184, %184 : vector<8x128xf32>
    %189 = arith.addf %187, %188 : vector<8x128xf32>
    %cst_72 = arith.constant 1.000000e-07 : f32
    %190 = vector.broadcast %cst_72 : f32 to vector<8x128xf32>
    %191 = arith.maximumf %189, %190 : vector<8x128xf32>
    %192 = arith.mulf %185, %185 : vector<8x128xf32>
    %193 = arith.mulf %186, %186 : vector<8x128xf32>
    %194 = arith.addf %192, %193 : vector<8x128xf32>
    %cst_73 = arith.constant 1.000000e-07 : f32
    %195 = vector.broadcast %cst_73 : f32 to vector<8x128xf32>
    %196 = arith.maximumf %194, %195 : vector<8x128xf32>
    %197 = math.sqrt %196 : vector<8x128xf32>
    %198 = math.sqrt %191 : vector<8x128xf32>
    %199 = arith.subf %197, %198 : vector<8x128xf32>
    %200 = arith.mulf %199, %199 : vector<8x128xf32>
    %201 = arith.addf %176, %200 : vector<8x128xf32>
    %202 = arith.addf %177, %196 : vector<8x128xf32>
    %203 = math.log %191 : vector<8x128xf32>
    %204 = math.log %196 : vector<8x128xf32>
    %205 = arith.subf %203, %204 : vector<8x128xf32>
    %206 = math.absf %205 : vector<8x128xf32>
    %207 = arith.addf %182, %206 : vector<8x128xf32>
    %c64 = arith.constant 64 : index
    %c0_74 = arith.constant 0 : index
    %208 = vector.load %arg4[%c64, %c0_74] : memref<256x256xf32, #tpu.memory_space<vmem>>, vector<8x128xf32>
    %c64_75 = arith.constant 64 : index
    %c128_76 = arith.constant 128 : index
    %209 = vector.load %arg4[%c64_75, %c128_76] : memref<256x256xf32, #tpu.memory_space<vmem>>, vector<8x128xf32>
    %c192 = arith.constant 192 : index
    %c0_77 = arith.constant 0 : index
    %210 = vector.load %arg4[%c192, %c0_77] : memref<256x256xf32, #tpu.memory_space<vmem>>, vector<8x128xf32>
    %c192_78 = arith.constant 192 : index
    %c128_79 = arith.constant 128 : index
    %211 = vector.load %arg4[%c192_78, %c128_79] : memref<256x256xf32, #tpu.memory_space<vmem>>, vector<8x128xf32>
    %212 = arith.mulf %208, %208 : vector<8x128xf32>
    %213 = arith.mulf %209, %209 : vector<8x128xf32>
    %214 = arith.addf %212, %213 : vector<8x128xf32>
    %cst_80 = arith.constant 1.000000e-07 : f32
    %215 = vector.broadcast %cst_80 : f32 to vector<8x128xf32>
    %216 = arith.maximumf %214, %215 : vector<8x128xf32>
    %217 = arith.mulf %210, %210 : vector<8x128xf32>
    %218 = arith.mulf %211, %211 : vector<8x128xf32>
    %219 = arith.addf %217, %218 : vector<8x128xf32>
    %cst_81 = arith.constant 1.000000e-07 : f32
    %220 = vector.broadcast %cst_81 : f32 to vector<8x128xf32>
    %221 = arith.maximumf %219, %220 : vector<8x128xf32>
    %222 = math.sqrt %221 : vector<8x128xf32>
    %223 = math.sqrt %216 : vector<8x128xf32>
    %224 = arith.subf %222, %223 : vector<8x128xf32>
    %225 = arith.mulf %224, %224 : vector<8x128xf32>
    %226 = arith.addf %201, %225 : vector<8x128xf32>
    %227 = arith.addf %202, %221 : vector<8x128xf32>
    %228 = math.log %216 : vector<8x128xf32>
    %229 = math.log %221 : vector<8x128xf32>
    %230 = arith.subf %228, %229 : vector<8x128xf32>
    %231 = math.absf %230 : vector<8x128xf32>
    %232 = arith.addf %207, %231 : vector<8x128xf32>
    %c72 = arith.constant 72 : index
    %c0_82 = arith.constant 0 : index
    %233 = vector.load %arg4[%c72, %c0_82] : memref<256x256xf32, #tpu.memory_space<vmem>>, vector<8x128xf32>
    %c72_83 = arith.constant 72 : index
    %c128_84 = arith.constant 128 : index
    %234 = vector.load %arg4[%c72_83, %c128_84] : memref<256x256xf32, #tpu.memory_space<vmem>>, vector<8x128xf32>
    %c200 = arith.constant 200 : index
    %c0_85 = arith.constant 0 : index
    %235 = vector.load %arg4[%c200, %c0_85] : memref<256x256xf32, #tpu.memory_space<vmem>>, vector<8x128xf32>
    %c200_86 = arith.constant 200 : index
    %c128_87 = arith.constant 128 : index
    %236 = vector.load %arg4[%c200_86, %c128_87] : memref<256x256xf32, #tpu.memory_space<vmem>>, vector<8x128xf32>
    %237 = arith.mulf %233, %233 : vector<8x128xf32>
    %238 = arith.mulf %234, %234 : vector<8x128xf32>
    %239 = arith.addf %237, %238 : vector<8x128xf32>
    %cst_88 = arith.constant 1.000000e-07 : f32
    %240 = vector.broadcast %cst_88 : f32 to vector<8x128xf32>
    %241 = arith.maximumf %239, %240 : vector<8x128xf32>
    %242 = arith.mulf %235, %235 : vector<8x128xf32>
    %243 = arith.mulf %236, %236 : vector<8x128xf32>
    %244 = arith.addf %242, %243 : vector<8x128xf32>
    %cst_89 = arith.constant 1.000000e-07 : f32
    %245 = vector.broadcast %cst_89 : f32 to vector<8x128xf32>
    %246 = arith.maximumf %244, %245 : vector<8x128xf32>
    %247 = math.sqrt %246 : vector<8x128xf32>
    %248 = math.sqrt %241 : vector<8x128xf32>
    %249 = arith.subf %247, %248 : vector<8x128xf32>
    %250 = arith.mulf %249, %249 : vector<8x128xf32>
    %251 = arith.addf %226, %250 : vector<8x128xf32>
    %252 = arith.addf %227, %246 : vector<8x128xf32>
    %253 = math.log %241 : vector<8x128xf32>
    %254 = math.log %246 : vector<8x128xf32>
    %255 = arith.subf %253, %254 : vector<8x128xf32>
    %256 = math.absf %255 : vector<8x128xf32>
    %257 = arith.addf %232, %256 : vector<8x128xf32>
    %c80 = arith.constant 80 : index
    %c0_90 = arith.constant 0 : index
    %258 = vector.load %arg4[%c80, %c0_90] : memref<256x256xf32, #tpu.memory_space<vmem>>, vector<8x128xf32>
    %c80_91 = arith.constant 80 : index
    %c128_92 = arith.constant 128 : index
    %259 = vector.load %arg4[%c80_91, %c128_92] : memref<256x256xf32, #tpu.memory_space<vmem>>, vector<8x128xf32>
    %c208 = arith.constant 208 : index
    %c0_93 = arith.constant 0 : index
    %260 = vector.load %arg4[%c208, %c0_93] : memref<256x256xf32, #tpu.memory_space<vmem>>, vector<8x128xf32>
    %c208_94 = arith.constant 208 : index
    %c128_95 = arith.constant 128 : index
    %261 = vector.load %arg4[%c208_94, %c128_95] : memref<256x256xf32, #tpu.memory_space<vmem>>, vector<8x128xf32>
    %262 = arith.mulf %258, %258 : vector<8x128xf32>
    %263 = arith.mulf %259, %259 : vector<8x128xf32>
    %264 = arith.addf %262, %263 : vector<8x128xf32>
    %cst_96 = arith.constant 1.000000e-07 : f32
    %265 = vector.broadcast %cst_96 : f32 to vector<8x128xf32>
    %266 = arith.maximumf %264, %265 : vector<8x128xf32>
    %267 = arith.mulf %260, %260 : vector<8x128xf32>
    %268 = arith.mulf %261, %261 : vector<8x128xf32>
    %269 = arith.addf %267, %268 : vector<8x128xf32>
    %cst_97 = arith.constant 1.000000e-07 : f32
    %270 = vector.broadcast %cst_97 : f32 to vector<8x128xf32>
    %271 = arith.maximumf %269, %270 : vector<8x128xf32>
    %272 = math.sqrt %271 : vector<8x128xf32>
    %273 = math.sqrt %266 : vector<8x128xf32>
    %274 = arith.subf %272, %273 : vector<8x128xf32>
    %275 = arith.mulf %274, %274 : vector<8x128xf32>
    %276 = arith.addf %251, %275 : vector<8x128xf32>
    %277 = arith.addf %252, %271 : vector<8x128xf32>
    %278 = math.log %266 : vector<8x128xf32>
    %279 = math.log %271 : vector<8x128xf32>
    %280 = arith.subf %278, %279 : vector<8x128xf32>
    %281 = math.absf %280 : vector<8x128xf32>
    %282 = arith.addf %257, %281 : vector<8x128xf32>
    %c88 = arith.constant 88 : index
    %c0_98 = arith.constant 0 : index
    %283 = vector.load %arg4[%c88, %c0_98] : memref<256x256xf32, #tpu.memory_space<vmem>>, vector<8x128xf32>
    %c88_99 = arith.constant 88 : index
    %c128_100 = arith.constant 128 : index
    %284 = vector.load %arg4[%c88_99, %c128_100] : memref<256x256xf32, #tpu.memory_space<vmem>>, vector<8x128xf32>
    %c216 = arith.constant 216 : index
    %c0_101 = arith.constant 0 : index
    %285 = vector.load %arg4[%c216, %c0_101] : memref<256x256xf32, #tpu.memory_space<vmem>>, vector<8x128xf32>
    %c216_102 = arith.constant 216 : index
    %c128_103 = arith.constant 128 : index
    %286 = vector.load %arg4[%c216_102, %c128_103] : memref<256x256xf32, #tpu.memory_space<vmem>>, vector<8x128xf32>
    %287 = arith.mulf %283, %283 : vector<8x128xf32>
    %288 = arith.mulf %284, %284 : vector<8x128xf32>
    %289 = arith.addf %287, %288 : vector<8x128xf32>
    %cst_104 = arith.constant 1.000000e-07 : f32
    %290 = vector.broadcast %cst_104 : f32 to vector<8x128xf32>
    %291 = arith.maximumf %289, %290 : vector<8x128xf32>
    %292 = arith.mulf %285, %285 : vector<8x128xf32>
    %293 = arith.mulf %286, %286 : vector<8x128xf32>
    %294 = arith.addf %292, %293 : vector<8x128xf32>
    %cst_105 = arith.constant 1.000000e-07 : f32
    %295 = vector.broadcast %cst_105 : f32 to vector<8x128xf32>
    %296 = arith.maximumf %294, %295 : vector<8x128xf32>
    %297 = math.sqrt %296 : vector<8x128xf32>
    %298 = math.sqrt %291 : vector<8x128xf32>
    %299 = arith.subf %297, %298 : vector<8x128xf32>
    %300 = arith.mulf %299, %299 : vector<8x128xf32>
    %301 = arith.addf %276, %300 : vector<8x128xf32>
    %302 = arith.addf %277, %296 : vector<8x128xf32>
    %303 = math.log %291 : vector<8x128xf32>
    %304 = math.log %296 : vector<8x128xf32>
    %305 = arith.subf %303, %304 : vector<8x128xf32>
    %306 = math.absf %305 : vector<8x128xf32>
    %307 = arith.addf %282, %306 : vector<8x128xf32>
    %c96 = arith.constant 96 : index
    %c0_106 = arith.constant 0 : index
    %308 = vector.load %arg4[%c96, %c0_106] : memref<256x256xf32, #tpu.memory_space<vmem>>, vector<8x128xf32>
    %c96_107 = arith.constant 96 : index
    %c128_108 = arith.constant 128 : index
    %309 = vector.load %arg4[%c96_107, %c128_108] : memref<256x256xf32, #tpu.memory_space<vmem>>, vector<8x128xf32>
    %c224 = arith.constant 224 : index
    %c0_109 = arith.constant 0 : index
    %310 = vector.load %arg4[%c224, %c0_109] : memref<256x256xf32, #tpu.memory_space<vmem>>, vector<8x128xf32>
    %c224_110 = arith.constant 224 : index
    %c128_111 = arith.constant 128 : index
    %311 = vector.load %arg4[%c224_110, %c128_111] : memref<256x256xf32, #tpu.memory_space<vmem>>, vector<8x128xf32>
    %312 = arith.mulf %308, %308 : vector<8x128xf32>
    %313 = arith.mulf %309, %309 : vector<8x128xf32>
    %314 = arith.addf %312, %313 : vector<8x128xf32>
    %cst_112 = arith.constant 1.000000e-07 : f32
    %315 = vector.broadcast %cst_112 : f32 to vector<8x128xf32>
    %316 = arith.maximumf %314, %315 : vector<8x128xf32>
    %317 = arith.mulf %310, %310 : vector<8x128xf32>
    %318 = arith.mulf %311, %311 : vector<8x128xf32>
    %319 = arith.addf %317, %318 : vector<8x128xf32>
    %cst_113 = arith.constant 1.000000e-07 : f32
    %320 = vector.broadcast %cst_113 : f32 to vector<8x128xf32>
    %321 = arith.maximumf %319, %320 : vector<8x128xf32>
    %322 = math.sqrt %321 : vector<8x128xf32>
    %323 = math.sqrt %316 : vector<8x128xf32>
    %324 = arith.subf %322, %323 : vector<8x128xf32>
    %325 = arith.mulf %324, %324 : vector<8x128xf32>
    %326 = arith.addf %301, %325 : vector<8x128xf32>
    %327 = arith.addf %302, %321 : vector<8x128xf32>
    %328 = math.log %316 : vector<8x128xf32>
    %329 = math.log %321 : vector<8x128xf32>
    %330 = arith.subf %328, %329 : vector<8x128xf32>
    %331 = math.absf %330 : vector<8x128xf32>
    %332 = arith.addf %307, %331 : vector<8x128xf32>
    %c104 = arith.constant 104 : index
    %c0_114 = arith.constant 0 : index
    %333 = vector.load %arg4[%c104, %c0_114] : memref<256x256xf32, #tpu.memory_space<vmem>>, vector<8x128xf32>
    %c104_115 = arith.constant 104 : index
    %c128_116 = arith.constant 128 : index
    %334 = vector.load %arg4[%c104_115, %c128_116] : memref<256x256xf32, #tpu.memory_space<vmem>>, vector<8x128xf32>
    %c232 = arith.constant 232 : index
    %c0_117 = arith.constant 0 : index
    %335 = vector.load %arg4[%c232, %c0_117] : memref<256x256xf32, #tpu.memory_space<vmem>>, vector<8x128xf32>
    %c232_118 = arith.constant 232 : index
    %c128_119 = arith.constant 128 : index
    %336 = vector.load %arg4[%c232_118, %c128_119] : memref<256x256xf32, #tpu.memory_space<vmem>>, vector<8x128xf32>
    %337 = arith.mulf %333, %333 : vector<8x128xf32>
    %338 = arith.mulf %334, %334 : vector<8x128xf32>
    %339 = arith.addf %337, %338 : vector<8x128xf32>
    %cst_120 = arith.constant 1.000000e-07 : f32
    %340 = vector.broadcast %cst_120 : f32 to vector<8x128xf32>
    %341 = arith.maximumf %339, %340 : vector<8x128xf32>
    %342 = arith.mulf %335, %335 : vector<8x128xf32>
    %343 = arith.mulf %336, %336 : vector<8x128xf32>
    %344 = arith.addf %342, %343 : vector<8x128xf32>
    %cst_121 = arith.constant 1.000000e-07 : f32
    %345 = vector.broadcast %cst_121 : f32 to vector<8x128xf32>
    %346 = arith.maximumf %344, %345 : vector<8x128xf32>
    %347 = math.sqrt %346 : vector<8x128xf32>
    %348 = math.sqrt %341 : vector<8x128xf32>
    %349 = arith.subf %347, %348 : vector<8x128xf32>
    %350 = arith.mulf %349, %349 : vector<8x128xf32>
    %351 = arith.addf %326, %350 : vector<8x128xf32>
    %352 = arith.addf %327, %346 : vector<8x128xf32>
    %353 = math.log %341 : vector<8x128xf32>
    %354 = math.log %346 : vector<8x128xf32>
    %355 = arith.subf %353, %354 : vector<8x128xf32>
    %356 = math.absf %355 : vector<8x128xf32>
    %357 = arith.addf %332, %356 : vector<8x128xf32>
    %c112 = arith.constant 112 : index
    %c0_122 = arith.constant 0 : index
    %358 = vector.load %arg4[%c112, %c0_122] : memref<256x256xf32, #tpu.memory_space<vmem>>, vector<8x128xf32>
    %c112_123 = arith.constant 112 : index
    %c128_124 = arith.constant 128 : index
    %359 = vector.load %arg4[%c112_123, %c128_124] : memref<256x256xf32, #tpu.memory_space<vmem>>, vector<8x128xf32>
    %c240 = arith.constant 240 : index
    %c0_125 = arith.constant 0 : index
    %360 = vector.load %arg4[%c240, %c0_125] : memref<256x256xf32, #tpu.memory_space<vmem>>, vector<8x128xf32>
    %c240_126 = arith.constant 240 : index
    %c128_127 = arith.constant 128 : index
    %361 = vector.load %arg4[%c240_126, %c128_127] : memref<256x256xf32, #tpu.memory_space<vmem>>, vector<8x128xf32>
    %362 = arith.mulf %358, %358 : vector<8x128xf32>
    %363 = arith.mulf %359, %359 : vector<8x128xf32>
    %364 = arith.addf %362, %363 : vector<8x128xf32>
    %cst_128 = arith.constant 1.000000e-07 : f32
    %365 = vector.broadcast %cst_128 : f32 to vector<8x128xf32>
    %366 = arith.maximumf %364, %365 : vector<8x128xf32>
    %367 = arith.mulf %360, %360 : vector<8x128xf32>
    %368 = arith.mulf %361, %361 : vector<8x128xf32>
    %369 = arith.addf %367, %368 : vector<8x128xf32>
    %cst_129 = arith.constant 1.000000e-07 : f32
    %370 = vector.broadcast %cst_129 : f32 to vector<8x128xf32>
    %371 = arith.maximumf %369, %370 : vector<8x128xf32>
    %372 = math.sqrt %371 : vector<8x128xf32>
    %373 = math.sqrt %366 : vector<8x128xf32>
    %374 = arith.subf %372, %373 : vector<8x128xf32>
    %375 = arith.mulf %374, %374 : vector<8x128xf32>
    %376 = arith.addf %351, %375 : vector<8x128xf32>
    %377 = arith.addf %352, %371 : vector<8x128xf32>
    %378 = math.log %366 : vector<8x128xf32>
    %379 = math.log %371 : vector<8x128xf32>
    %380 = arith.subf %378, %379 : vector<8x128xf32>
    %381 = math.absf %380 : vector<8x128xf32>
    %382 = arith.addf %357, %381 : vector<8x128xf32>
    %c120 = arith.constant 120 : index
    %c0_130 = arith.constant 0 : index
    %383 = vector.load %arg4[%c120, %c0_130] : memref<256x256xf32, #tpu.memory_space<vmem>>, vector<8x128xf32>
    %c120_131 = arith.constant 120 : index
    %c128_132 = arith.constant 128 : index
    %384 = vector.load %arg4[%c120_131, %c128_132] : memref<256x256xf32, #tpu.memory_space<vmem>>, vector<8x128xf32>
    %c248 = arith.constant 248 : index
    %c0_133 = arith.constant 0 : index
    %385 = vector.load %arg4[%c248, %c0_133] : memref<256x256xf32, #tpu.memory_space<vmem>>, vector<8x128xf32>
    %c248_134 = arith.constant 248 : index
    %c128_135 = arith.constant 128 : index
    %386 = vector.load %arg4[%c248_134, %c128_135] : memref<256x256xf32, #tpu.memory_space<vmem>>, vector<8x128xf32>
    %387 = arith.mulf %383, %383 : vector<8x128xf32>
    %388 = arith.mulf %384, %384 : vector<8x128xf32>
    %389 = arith.addf %387, %388 : vector<8x128xf32>
    %cst_136 = arith.constant 1.000000e-07 : f32
    %390 = vector.broadcast %cst_136 : f32 to vector<8x128xf32>
    %391 = arith.maximumf %389, %390 : vector<8x128xf32>
    %392 = arith.mulf %385, %385 : vector<8x128xf32>
    %393 = arith.mulf %386, %386 : vector<8x128xf32>
    %394 = arith.addf %392, %393 : vector<8x128xf32>
    %cst_137 = arith.constant 1.000000e-07 : f32
    %395 = vector.broadcast %cst_137 : f32 to vector<8x128xf32>
    %396 = arith.maximumf %394, %395 : vector<8x128xf32>
    %397 = math.sqrt %396 : vector<8x128xf32>
    %398 = math.sqrt %391 : vector<8x128xf32>
    %399 = arith.subf %397, %398 : vector<8x128xf32>
    %400 = arith.mulf %399, %399 : vector<8x128xf32>
    %401 = arith.addf %376, %400 : vector<8x128xf32>
    %402 = arith.addf %377, %396 : vector<8x128xf32>
    %403 = math.log %391 : vector<8x128xf32>
    %404 = math.log %396 : vector<8x128xf32>
    %405 = arith.subf %403, %404 : vector<8x128xf32>
    %406 = math.absf %405 : vector<8x128xf32>
    %407 = arith.addf %382, %406 : vector<8x128xf32>
    %c0_138 = arith.constant 0 : index
    %c0_139 = arith.constant 0 : index
    %c0_140 = arith.constant 0 : index
    %408 = vector.load %arg3[%c0_138, %c0_139, %c0_140] : memref<3x8x128xf32, #tpu.memory_space<vmem>>, vector<1x8x128xf32>
    %409 = vector.shape_cast %408 : vector<1x8x128xf32> to vector<8x128xf32>
    %410 = vector.shape_cast %401 : vector<8x128xf32> to vector<1x8x128xf32>
    tpu.vector_store %arg3[%c0_138, %c0_139, %c0_140], %410 {strides = array<i32>} : memref<3x8x128xf32, #tpu.memory_space<vmem>>, vector<1x8x128xf32>,
    %c1 = arith.constant 1 : index
    %c0_141 = arith.constant 0 : index
    %c0_142 = arith.constant 0 : index
    %411 = vector.load %arg3[%c1, %c0_141, %c0_142] : memref<3x8x128xf32, #tpu.memory_space<vmem>>, vector<1x8x128xf32>
    %412 = vector.shape_cast %411 : vector<1x8x128xf32> to vector<8x128xf32>
    %413 = vector.shape_cast %402 : vector<8x128xf32> to vector<1x8x128xf32>
    tpu.vector_store %arg3[%c1, %c0_141, %c0_142], %413 {strides = array<i32>} : memref<3x8x128xf32, #tpu.memory_space<vmem>>, vector<1x8x128xf32>,
    %cst_143 = arith.constant 5.000000e-01 : f32
    %414 = vector.broadcast %cst_143 : f32 to vector<8x128xf32>
    %415 = arith.mulf %407, %414 : vector<8x128xf32>
    %c2 = arith.constant 2 : index
    %c0_144 = arith.constant 0 : index
    %c0_145 = arith.constant 0 : index
    %416 = vector.load %arg3[%c2, %c0_144, %c0_145] : memref<3x8x128xf32, #tpu.memory_space<vmem>>, vector<1x8x128xf32>
    %417 = vector.shape_cast %416 : vector<1x8x128xf32> to vector<8x128xf32>
    %418 = vector.shape_cast %415 : vector<8x128xf32> to vector<1x8x128xf32>
    tpu.vector_store %arg3[%c2, %c0_144, %c0_145], %418 {strides = array<i32>} : memref<3x8x128xf32, #tpu.memory_space<vmem>>, vector<1x8x128xf32>,
    return
  }
  func.func @transform_0(%arg0: i32) -> (i32, i32, i32) {
    %c0_i32 = arith.constant 0 : i32
    %c0_i32_0 = arith.constant 0 : i32
    %c0_i32_1 = arith.constant 0 : i32
    return %c0_i32, %arg0, %c0_i32_0 : i32, i32, i32
  }
  func.func @transform_1(%arg0: i32) -> (i32, i32) {
    %c0_i32 = arith.constant 0 : i32
    %c0_i32_0 = arith.constant 0 : i32
    %c0_i32_1 = arith.constant 0 : i32
    return %c0_i32, %c0_i32_0 : i32, i32
  }
  func.func @transform_2(%arg0: i32) -> (i32, i32, i32) {
    %c0_i32 = arith.constant 0 : i32
    %c0_i32_0 = arith.constant 0 : i32
    %c0_i32_1 = arith.constant 0 : i32
    return %arg0, %c0_i32, %c0_i32_0 : i32, i32, i32
  }
}

</mosaic_0001>

<bundles_post_ra>
// kernel: stft_loss.1
= control target key start
LH: loop header
LB: loop body
LE: loop exit
PB: predicated region body
PF: predicated region fallthrough
CT: control target
= control target key end

     0   :  { %v1287_v1 = vmov 0   ;;  %vm172_vm0 = vcmask 523264   ;;  %s1990_s1 = inlined_call_operand.vmem [shape: bf16[64,256], index: 1, kind: input, shape index: {}]   ;;  %s1991_s0 = inlined_call_operand.vmem [shape: bf16[2,128,64], index: 0, kind: input, shape index: {}]   ;;  %s1992_s2 = inlined_call_operand.vmem [shape: f32[3,8,128], index: 2, kind: output, shape index: {}]  }
   0x1   :  { %v1131_v0 = vld [vmem:[%s1990_s1 + $0x4] ss:$8 sps:$4 sm:$0xff]   ;;  %253 = vmatprep.mubr.bf16.mxu0 %v1287_v1  ;;  %333 = vmatprep.mubr.bf16.mxu1 %v1287_v1  ;;  %v1133_v2 = vld [vmem:[%s1990_s1] ss:$8 sps:$4 sm:$0xff]   ;;  %v1134_v3 = vld [vmem:[%s1990_s1 + $0x14] ss:$8 sps:$4 sm:$0xff]  }
   0x2   :  { %221 = vmatprep.subr.bf16.mxu0 %v1131_v0  ;;  %1122 = vmatprep.subr.bf16.mxu1 %v1131_v0  ;;  %v1136_v4 = vld [vmem:[%s1990_s1 + $0x10] ss:$8 sps:$4 sm:$0xff]   ;;  %v1137_v5 = vld [vmem:[%s1990_s1 + $0x24] ss:$8 sps:$4 sm:$0xff]   ;;  %v1139_v6 = vld [vmem:[%s1990_s1 + $0x20] ss:$8 sps:$4 sm:$0xff]  }
   0x3   :  { %222 = vmatpush1.bf16.msra.mxu0 %v1133_v2  ;;  %1126 = vmatpush1.bf16.msra.mxu1 %v1133_v2  ;;  %v1140_v7 = vld [vmem:[%s1990_s1 + $0x34] ss:$8 sps:$4 sm:$0xff]   ;;  %v1142_v8 = vld [vmem:[%s1990_s1 + $0x30] ss:$8 sps:$4 sm:$0xff]   ;;  %v1143_v9 = vld [vmem:[%s1991_s0] sm:$0xff]  }
   0x4   :  { %223 = vmatprep.subr.bf16.mxu0 %v1134_v3  ;;  %1123 = vmatprep.subr.bf16.mxu1 %v1134_v3  ;;  %v1144_v10 = vld [vmem:[%s1991_s0 + $0x40] sm:$0xff]   ;;  %v1145_v11 = vld [vmem:[%s1991_s0 + $0x8] sm:$0xff]   ;;  %v1147_v13 = vld [vmem:[%s1991_s0 + $0x10] sm:$0xff]  }
   0x5   :  { %v1146_v12 = vld [vmem:[%s1991_s0 + $0x48] sm:$0xff]   ;;  %v1148_v14 = vld [vmem:[%s1991_s0 + $0x50] sm:$0xff]   ;;  %v1149_v15 = vld [vmem:[%s1991_s0 + $0x18] sm:$0xff]  }
   0x6   :  { %v1150_v16 = vld [vmem:[%s1991_s0 + $0x58] sm:$0xff]   ;;  %v1151_v17 = vld [vmem:[%s1991_s0 + $0x20] sm:$0xff]   ;;  %v1153_v19 = vld [vmem:[%s1991_s0 + $0x28] sm:$0xff]  }
   0x7   :  { %224 = vmatpush1.bf16.msra.mxu0 %v1136_v4  ;;  %1127 = vmatpush1.bf16.msra.mxu1 %v1136_v4  ;;  %v1152_v18 = vld [vmem:[%s1991_s0 + $0x60] sm:$0xff]   ;;  %v1154_v20 = vld [vmem:[%s1991_s0 + $0x68] sm:$0xff]   ;;  %v1155_v21 = vld [vmem:[%s1991_s0 + $0x30] sm:$0xff]  }
   0x8   :  { %225 = vmatprep.subr.bf16.mxu0 %v1137_v5  ;;  %1124 = vmatprep.subr.bf16.mxu1 %v1137_v5  ;;  %v1156_v22 = vld [vmem:[%s1991_s0 + $0x70] sm:$0xff]   ;;  %v1157_v23 = vld [vmem:[%s1991_s0 + $0x38] sm:$0xff]  }
   0x9   :  { %v1158_v24 = vld [vmem:[%s1991_s0 + $0x78] sm:$0xff]  }
   0xb   :  { %226 = vmatpush1.bf16.msra.mxu0 %v1139_v6  ;;  %1128 = vmatpush1.bf16.msra.mxu1 %v1139_v6 }
   0xc   :  { %227 = vmatprep.subr.bf16.mxu0 %v1140_v7  ;;  %1125 = vmatprep.subr.bf16.mxu1 %v1140_v7 }
   0xf   :  { %228 = vmatpush1.bf16.msra.mxu0 %v1142_v8  ;;  %1129 = vmatpush1.bf16.msra.mxu1 %v1142_v8 }
  0x12   :  { %1104 = vmatmul.mubr.msk.bf16.vlgmr.msra.gmra.mrb[0].mxu0 %vm172_vm0, %v1143_v9  ;;  %1112 = vmatmul.mubr.msk.bf16.vlgmr.msra.gmra.mrb[0].mxu1 %vm172_vm0, %v1144_v10 }
  0x13   :  { %263 = vmatprep.mubr.bf16.mxu0 %v1287_v1  ;;  %343 = vmatprep.mubr.bf16.mxu1 %v1287_v1 }
  0x1a   :  { %1105 = vmatmul.mubr.msk.bf16.gmra.mrb[4].mxu0 %vm172_vm0, %v1145_v11  ;;  %1113 = vmatmul.mubr.msk.bf16.gmra.mrb[4].mxu1 %vm172_vm0, %v1146_v12 }
  0x1b   :  { %273 = vmatprep.mubr.bf16.mxu0 %v1287_v1  ;;  %353 = vmatprep.mubr.bf16.mxu1 %v1287_v1 }
  0x22   :  { %1106 = vmatmul.mubr.msk.bf16.gmra.mrb[8].mxu0 %vm172_vm0, %v1147_v13  ;;  %1114 = vmatmul.mubr.msk.bf16.gmra.mrb[8].mxu1 %vm172_vm0, %v1148_v14 }
  0x23   :  { %283 = vmatprep.mubr.bf16.mxu0 %v1287_v1  ;;  %363 = vmatprep.mubr.bf16.mxu1 %v1287_v1 }
  0x2a   :  { %1107 = vmatmul.mubr.msk.bf16.gmra.mrb[12].mxu0 %vm172_vm0, %v1149_v15  ;;  %1115 = vmatmul.mubr.msk.bf16.gmra.mrb[12].mxu1 %vm172_vm0, %v1150_v16 }
  0x2b   :  { %293 = vmatprep.mubr.bf16.mxu0 %v1287_v1  ;;  %373 = vmatprep.mubr.bf16.mxu1 %v1287_v1 }
  0x32   :  { %1108 = vmatmul.mubr.msk.bf16.gmra.mrb[16].mxu0 %vm172_vm0, %v1151_v17  ;;  %1116 = vmatmul.mubr.msk.bf16.gmra.mrb[16].mxu1 %vm172_vm0, %v1152_v18 }
  0x33   :  { %303 = vmatprep.mubr.bf16.mxu0 %v1287_v1  ;;  %383 = vmatprep.mubr.bf16.mxu1 %v1287_v1 }
  0x3a   :  { %1109 = vmatmul.mubr.msk.bf16.gmra.mrb[20].mxu0 %vm172_vm0, %v1153_v19  ;;  %1117 = vmatmul.mubr.msk.bf16.gmra.mrb[20].mxu1 %vm172_vm0, %v1154_v20 }
  0x3b   :  { %313 = vmatprep.mubr.bf16.mxu0 %v1287_v1  ;;  %393 = vmatprep.mubr.bf16.mxu1 %v1287_v1 }
  0x42   :  { %1110 = vmatmul.mubr.msk.bf16.gmra.mrb[24].mxu0 %vm172_vm0, %v1155_v21  ;;  %1118 = vmatmul.mubr.msk.bf16.gmra.mrb[24].mxu1 %vm172_vm0, %v1156_v22 }
  0x43   :  { %323 = vmatprep.mubr.bf16.mxu0 %v1287_v1  ;;  %403 = vmatprep.mubr.bf16.mxu1 %v1287_v1 }
  0x4a   :  { %1111 = vmatmul.mubr.msk.bf16.gmra.mrb[28].mxu0 %vm172_vm0, %v1157_v23  ;;  %1119 = vmatmul.mubr.msk.bf16.gmra.mrb[28].mxu1 %vm172_vm0, %v1158_v24 }
  0xe5   :  { %v255_v25 = vpop.f32.mrb[0].mxu0  ;;  %v335_v26 = vpop.f32.mrb[0].mxu1 }
  0xe6   :  { %v482_v27 = vmul.f32 %v255_v25, %v255_v25  ;;  %v486_v28 = vmul.f32 %v335_v26, %v335_v26  ;;  %v257_v29 = vpop.f32.mrb[1].mxu0  ;;  %v337_v30 = vpop.f32.mrb[1].mxu1 }
  0xe7   :  { %v483_v31 = vmul.f32 %v257_v29, %v257_v29  ;;  %v487_v32 = vmul.f32 %v337_v30, %v337_v30  ;;  %v259_v33 = vpop.f32.mrb[2].mxu0  ;;  %v339_v34 = vpop.f32.mrb[2].mxu1 }
  0xe8   :  { %v519_v35 = vmul.f32 %v259_v33, %v259_v33  ;;  %v523_v36 = vmul.f32 %v339_v34, %v339_v34  ;;  %v261_v37 = vpop.f32.mrb[3].mxu0  ;;  %v341_v38 = vpop.f32.mrb[3].mxu1 }
  0xe9   :  { %v484_v39 = vadd.f32 %v483_v31, %v482_v27  ;;  %v488_v40 = vadd.f32 %v487_v32, %v486_v28  ;;  %v520_v41 = vmul.f32 %v261_v37, %v261_v37  ;;  %v524_v42 = vmul.f32 %v341_v38, %v341_v38 }
  0xeb   :  { %v1407_v43 = vmax.f32 %v484_v39, 1e-07  ;;  %v1409_v44 = vmax.f32 %v488_v40, 1e-07  ;;  %v521_v45 = vadd.f32 %v520_v41, %v519_v35  ;;  %v525_v46 = vadd.f32 %v524_v42, %v523_v36 }
  0xed   :  { %1159 = vrsqrt.f32 %v1407_v43  ;;  %v265_v47 = vpop.f32.mrb[4].mxu0  ;;  %v345_v48 = vpop.f32.mrb[4].mxu1  ;;  %v1414_v51 = vmax.f32 %v521_v45, 1e-07  ;;  %v1416_v52 = vmax.f32 %v525_v46, 1e-07 }
  0xee   :  { %1161 = vlog2.f32 %v1407_v43  ;;  %v267_v49 = vpop.f32.mrb[5].mxu0  ;;  %v347_v50 = vpop.f32.mrb[5].mxu1  ;;  %v556_v53 = vmul.f32 %v265_v47, %v265_v47  ;;  %v560_v56 = vmul.f32 %v345_v48, %v345_v48  ;;  %vm499_vm1 = vcmp.eq.f32.partialorder %v1407_v43, inf }
  0xef   :  { %1163 = vrsqrt.f32 %v1409_v44  ;;  %v269_v54 = vpop.f32.mrb[6].mxu0  ;;  %v349_v55 = vpop.f32.mrb[6].mxu1  ;;  %v557_v57 = vmul.f32 %v267_v49, %v267_v49  ;;  %v561_v58 = vmul.f32 %v347_v50, %v347_v50  ;;  %vm501_vm2 = vcmp.eq.f32.partialorder %v1407_v43, 0.0 }
  0xf0   :  { %1165 = vlog2.f32 %v1409_v44  ;;  %v271_v59 = vpop.f32.mrb[7].mxu0  ;;  %v351_v60 = vpop.f32.mrb[7].mxu1  ;;  %v502_v61 = vand.u32 2147483648, %v1407_v43  ;;  %vm492_vm3 = vcmp.eq.f32.partialorder %v1409_v44, inf  ;;  %v544_v62 = vadd.f32 %v1416_v52, %v1409_v44 }
  0xf1   :  { %1167 = vrsqrt.f32 %v1414_v51  ;;  %v558_v63 = vadd.f32 %v557_v57, %v556_v53  ;;  %v562_v0 = vadd.f32 %v561_v58, %v560_v56  ;;  %vm494_vm4 = vcmp.eq.f32.partialorder %v1409_v44, 0.0 }
  0xf2   :  { %1169 = vlog2.f32 %v1414_v51  ;;  %v495_v1 = vand.u32 2147483648, %v1409_v44  ;;  %v593_v2 = vmul.f32 %v269_v54, %v269_v54  ;;  %v594_v3 = vmul.f32 %v271_v59, %v271_v59 }
  0xf3   :  { %1171 = vrsqrt.f32 %v1416_v52  ;;  %v1431_v4 = vmax.f32 %v558_v63, 1e-07  ;;  %v1433_v5 = vmax.f32 %v562_v0, 1e-07  ;;  %vm536_vm5 = vcmp.eq.f32.partialorder %v1414_v51, inf }
  0xf4   :  { %1173 = vlog2.f32 %v1416_v52  ;;  %vm538_vm6 = vcmp.eq.f32.partialorder %v1414_v51, 0.0  ;;  %v539_v8 = vand.u32 2147483648, %v1414_v51  ;;  %v595_v9 = vadd.f32 %v594_v3, %v593_v2 }
  0xf5   :  { %v275_v6 = vpop.f32.mrb[8].mxu0  ;;  %v355_v7 = vpop.f32.mrb[8].mxu1  ;;  %vm529_vm7 = vcmp.eq.f32.partialorder %v1416_v52, inf  ;;  %1175 = vrsqrt.f32 %v1431_v4  ;;  %v597_v13 = vmul.f32 %v349_v55, %v349_v55  ;;  %v598_v14 = vmul.f32 %v351_v60, %v351_v60 }
  0xf6   :  { %v277_v10 = vpop.f32.mrb[9].mxu0  ;;  %v1438_v11 = vpop.f32.mrb[9].mxu1  ;;  %vm531_vm8 = vcmp.eq.f32.partialorder %v1416_v52, 0.0  ;;  %v532_v19 = vand.u32 2147483648, %v1416_v52  ;;  %1177 = vlog2.f32 %v1431_v4  ;;  %v581_v24 = vadd.f32 %v1433_v5, %v544_v62 }
  0xf7   :  { %v1160_v12 = vpop.eup %1159  ;;  %v1442_v15 = vpop.f32.mrb[10].mxu0  ;;  %1179 = vrsqrt.f32 %v1433_v5  ;;  %v630_v25 = vmul.f32 %v275_v6, %v275_v6  ;;  %v1461_v29 = vmax.f32 %v595_v9, 1e-07  ;;  %v599_v33 = vadd.f32 %v598_v14, %v597_v13 }
  0xf8   :  { %v1444_v16 = vpop.f32.mrb[10].mxu1  ;;  %v1162_v17 = vpop.eup %1161  ;;  %v498_v18 = vmul.f32 %v1160_v12, %v1407_v43  ;;  %1181 = vlog2.f32 %v1433_v5  ;;  %v634_v34 = vmul.f32 %v355_v7, %v355_v7  ;;  %v631_v38 = vmul.f32 %v277_v10, %v277_v10 }
  0xf9   :  { %v1450_v20 = vpop.f32.mrb[11].mxu0  ;;  %v1452_v21 = vpop.f32.mrb[11].mxu1  ;;  %v509_v23 = vmul.f32 0.6931472, %v1162_v17  ;;  %1183 = vrsqrt.f32 %v1461_v29  ;;  %vm573_vm9 = vcmp.eq.f32.partialorder %v1431_v4, inf  ;;  %vm575_vm10 = vcmp.eq.f32.partialorder %v1431_v4, 0.0 }
  0xfa   :  { %v1164_v22 = vpop.eup %1163  ;;  %v500_v27 = vsel %vm499_vm1, %v1407_v43, %v498_v18  ;;  %v576_v55 = vand.u32 2147483648, %v1431_v4  ;;  %1185 = vlog2.f32 %v1461_v29  ;;  %vm566_vm11 = vcmp.eq.f32.partialorder %v1433_v5, inf }
  0xfb   :  { %v1166_v26 = vpop.eup %1165  ;;  %v491_v28 = vmul.f32 %v1164_v22, %v1409_v44  ;;  %v503_v31 = vsel %vm501_vm2, %v502_v61, %v500_v27  ;;  %v1498_v59 = vmax.f32 %v599_v33, 1e-07  ;;  %v632_v60 = vadd.f32 %v631_v38, %v630_v25 }
  0xfc   :  { %v1168_v30 = vpop.eup %1167  ;;  %v511_v32 = vmul.f32 0.6931472, %v1166_v26  ;;  %vm568_vm12 = vcmp.eq.f32.partialorder %v1433_v5, 0.0  ;;  %v635_v7 = vmul.f32 %v1438_v11, %v1438_v11  ;;  %vm610_vm13 = vcmp.eq.f32.partialorder %v1461_v29, inf }
  0xfd   :  { %v1170_v35 = vpop.eup %1169  ;;  %v493_v36 = vsel %vm492_vm3, %v1409_v44, %v491_v28  ;;  %v535_v37 = vmul.f32 %v1168_v30, %v1414_v51  ;;  %v1473_v43 = vpop.f32.mrb[12].mxu0  ;;  %1187 = vrsqrt.f32 %v1498_v59  ;;  %vm612_vm14 = vcmp.eq.f32.partialorder %v1461_v29, 0.0 }
  0xfe   :  { %v1172_v39 = vpop.eup %1171  ;;  %v496_v40 = vsel %vm494_vm4, %v495_v1, %v493_v36  ;;  %v512_v41 = vsub.f32 %v509_v23, %v511_v32  ;;  %v546_v42 = vmul.f32 0.6931472, %v1170_v35  ;;  %v1475_v45 = vpop.f32.mrb[12].mxu1  ;;  %v569_v1 = vand.u32 2147483648, %v1433_v5 }
  0xff   :  { %v1174_v46 = vpop.eup %1173  ;;  %v504_v47 = vsub.f32 %v496_v40, %v503_v31  ;;  %v537_v48 = vsel %vm536_vm5, %v1414_v51, %v535_v37  ;;  %v528_v49 = vmul.f32 %v1172_v39, %v1416_v52  ;;  %v1482_v44 = vpop.f32.mrb[13].mxu0  ;;  %1189 = vlog2.f32 %v1498_v59 }
 0x100   :  { %v1484_v50 = vpop.f32.mrb[13].mxu1  ;;  %v540_v53 = vsel %vm538_vm6, %v539_v8, %v537_v48  ;;  %v548_v54 = vmul.f32 0.6931472, %v1174_v46  ;;  %v1490_v56 = vpop.f32.mrb[14].mxu0  ;;  %v513_v10 = vand.u32 2147483647, %v512_v41 }
 0x101   :  { %v1492_v57 = vpop.f32.mrb[14].mxu1  ;;  %v530_v58 = vsel %vm529_vm7, %v1416_v52, %v528_v49  ;;  %v1500_v51 = vpop.f32.mrb[15].mxu0  ;;  %v505_v9 = vmul.f32 %v504_v47, %v504_v47  ;;  %v1527_v31 = vmax.f32 %v632_v60, 1e-07  ;;  %v667_v47 = vmul.f32 %v1442_v15, %v1442_v15 }
 0x102   :  { %v1502_v61 = vpop.f32.mrb[15].mxu1  ;;  %v1176_v62 = vpop.eup %1175  ;;  %v533_v63 = vsel %vm531_vm8, %v532_v19, %v530_v58  ;;  %v549_v0 = vsub.f32 %v546_v42, %v548_v54  ;;  %v618_v19 = vadd.f32 %v1498_v59, %v581_v24  ;;  %v636_v24 = vadd.f32 %v635_v7, %v634_v34 }
 0x103   :  { %v1178_v2 = vpop.eup %1177  ;;  %v541_v3 = vsub.f32 %v533_v63, %v540_v53  ;;  %v572_v6 = vmul.f32 %v1176_v62, %v1431_v4  ;;  %v613_v34 = vand.u32 2147483648, %v1461_v29  ;;  %1191 = vrsqrt.f32 %v1527_v31 }
 0x104   :  { %v1180_v8 = vpop.eup %1179  ;;  %v550_v12 = vand.u32 2147483647, %v549_v0  ;;  %v583_v52 = vmul.f32 0.6931472, %v1178_v2  ;;  %1193 = vlog2.f32 %v1527_v31  ;;  %vm603_vm15 = vcmp.eq.f32.partialorder %v1498_v59, inf }
 0x105   :  { %v1182_v13 = vpop.eup %1181  ;;  %v542_v14 = vmul.f32 %v541_v3, %v541_v3  ;;  %v574_v17 = vsel %vm573_vm9, %v1431_v4, %v572_v6  ;;  %v565_v18 = vmul.f32 %v1180_v8, %v1433_v5  ;;  %v1520_v25 = vpop.f32.mrb[16].mxu0  ;;  %v1553_v49 = vmax.f32 %v636_v24, 1e-07 }
 0x106   :  { %v551_v22 = vadd.f32 %v550_v12, %v513_v10  ;;  %v577_v23 = vsel %vm575_vm10, %v576_v55, %v574_v17  ;;  %v585_v11 = vmul.f32 0.6931472, %v1182_v13  ;;  %v1522_v26 = vpop.f32.mrb[16].mxu1  ;;  %v1184_v27 = vpop.eup %1183  ;;  %v671_v53 = vmul.f32 %v1444_v16, %v1444_v16 }
 0x107   :  { %v543_v28 = vadd.f32 %v542_v14, %v505_v9  ;;  %v567_v30 = vsel %vm566_vm11, %v1433_v5, %v565_v18  ;;  %v1529_v32 = vpop.f32.mrb[17].mxu0  ;;  %v1531_v4 = vpop.f32.mrb[17].mxu1  ;;  %v609_v36 = vmul.f32 %v1184_v27, %v1461_v29  ;;  %v606_v55 = vand.u32 2147483648, %v1498_v59 }
 0x108   :  { %v570_v33 = vsel %vm568_vm12, %v569_v1, %v567_v30  ;;  %v586_v35 = vsub.f32 %v583_v52, %v585_v11  ;;  %v1537_v37 = vpop.f32.mrb[18].mxu0  ;;  %v1539_v38 = vpop.f32.mrb[18].mxu1  ;;  %v668_v58 = vmul.f32 %v1450_v20, %v1450_v20  ;;  %v672_v60 = vmul.f32 %v1452_v21, %v1452_v21 }
 0x109   :  { %v578_v39 = vsub.f32 %v570_v33, %v577_v23  ;;  %v1544_v40 = vpop.f32.mrb[19].mxu0  ;;  %v1546_v5 = vpop.f32.mrb[19].mxu1  ;;  %v611_v46 = vsel %vm610_vm13, %v1461_v29, %v609_v36  ;;  %1195 = vrsqrt.f32 %v1553_v49  ;;  %v655_v16 = vadd.f32 %v1553_v49, %v618_v19 }
 0x10a   :  { %v1186_v41 = vpop.eup %1185  ;;  %v587_v42 = vand.u32 2147483647, %v586_v35  ;;  %v614_v15 = vsel %vm612_vm14, %v613_v34, %v611_v46  ;;  %1197 = vlog2.f32 %v1553_v49  ;;  %v704_v20 = vmul.f32 %v1473_v43, %v1473_v43 }
 0x10b   :  { %v579_v48 = vmul.f32 %v578_v39, %v578_v39  ;;  %v1188_v62 = vpop.eup %1187  ;;  %v620_v0 = vmul.f32 0.6931472, %v1186_v41  ;;  %v669_v3 = vadd.f32 %v668_v58, %v667_v47  ;;  %v673_v6 = vadd.f32 %v672_v60, %v671_v53 }
 0x10c   :  { %v588_v54 = vadd.f32 %v587_v42, %v551_v22  ;;  %v602_v1 = vmul.f32 %v1188_v62, %v1498_v59  ;;  %v708_v29 = vmul.f32 %v1475_v45, %v1475_v45  ;;  %v705_v7 = vmul.f32 %v1482_v44, %v1482_v44  ;;  %v1190_v10 = vpop.eup %1189 }
 0x10d   :  { %v580_v63 = vadd.f32 %v579_v48, %v543_v28  ;;  %v1570_v2 = vpop.f32.mrb[20].mxu0  ;;  %v1572_v21 = vpop.f32.mrb[20].mxu1  ;;  %vm605_vm0 = vcmp.eq.f32.partialorder %v1498_v59, 0.0  ;;  %vm647_vm1 = vcmp.eq.f32.partialorder %v1527_v31, inf  ;;  %v709_v12 = vmul.f32 %v1484_v50, %v1484_v50 }
 0x10e   :  { %v1578_v8 = vpop.f32.mrb[21].mxu0  ;;  %v1580_v9 = vpop.f32.mrb[21].mxu1  ;;  %v604_v43 = vsel %vm603_vm15, %v1498_v59, %v602_v1  ;;  %v622_v13 = vmul.f32 0.6931472, %v1190_v10  ;;  %v1593_v14 = vmax.f32 %v669_v3, 1e-07  ;;  %v706_v19 = vadd.f32 %v705_v7, %v704_v20 }
 0x10f   :  { %v1589_v45 = vpop.f32.mrb[22].mxu0  ;;  %v1591_v52 = vpop.f32.mrb[22].mxu1  ;;  %v607_v44 = vsel %vm605_vm0, %v606_v55, %v604_v43  ;;  %v1595_v17 = vmax.f32 %v673_v6, 1e-07  ;;  %vm649_vm2 = vcmp.eq.f32.partialorder %v1527_v31, 0.0  ;;  %v710_v59 = vadd.f32 %v709_v12, %v708_v29 }
 0x110   :  { %v615_v18 = vsub.f32 %v607_v44, %v614_v15  ;;  %v1598_v22 = vpop.f32.mrb[23].mxu0  ;;  %v1600_v23 = vpop.f32.mrb[23].mxu1  ;;  %v623_v11 = vsub.f32 %v620_v0, %v622_v13  ;;  %v650_v27 = vand.u32 2147483648, %v1527_v31  ;;  %1199 = vrsqrt.f32 %v1593_v14 }
 0x111   :  { %v1192_v50 = vpop.eup %1191  ;;  %v741_v28 = vmul.f32 %v1490_v56, %v1490_v56  ;;  %1201 = vlog2.f32 %v1593_v14  ;;  %v742_v35 = vmul.f32 %v1500_v51, %v1500_v51  ;;  %vm640_vm3 = vcmp.eq.f32.partialorder %v1553_v49, inf }
 0x112   :  { %v1194_v30 = vpop.eup %1193  ;;  %v616_v24 = vmul.f32 %v615_v18, %v615_v18  ;;  %v646_v33 = vmul.f32 %v1192_v50, %v1527_v31  ;;  %v624_v36 = vand.u32 2147483647, %v623_v11  ;;  %vm642_vm4 = vcmp.eq.f32.partialorder %v1553_v49, 0.0 }
 0x113   :  { %1203 = vrsqrt.f32 %v1595_v17  ;;  %v643_v34 = vand.u32 2147483648, %v1553_v49  ;;  %v745_v41 = vmul.f32 %v1492_v57, %v1492_v57  ;;  %v1196_v46 = vpop.eup %1195  ;;  %v657_v48 = vmul.f32 0.6931472, %v1194_v30 }
 0x114   :  { %v617_v39 = vadd.f32 %v616_v24, %v580_v63  ;;  %v648_v56 = vsel %vm647_vm1, %v1527_v31, %v646_v33  ;;  %v625_v47 = vadd.f32 %v624_v36, %v588_v54  ;;  %v692_v53 = vadd.f32 %v1595_v17, %v655_v16  ;;  %v1198_v60 = vpop.eup %1197 }
 0x115   :  { %v1619_v42 = vpop.f32.mrb[24].mxu0  ;;  %v1621_v51 = vpop.f32.mrb[24].mxu1  ;;  %1205 = vlog2.f32 %v1595_v17  ;;  %v639_v62 = vmul.f32 %v1196_v46, %v1553_v49  ;;  %v1630_v63 = vmax.f32 %v706_v19, 1e-07  ;;  %v1632_v57 = vmax.f32 %v710_v59, 1e-07 }
 0x116   :  { %v1625_v55 = vpop.f32.mrb[25].mxu0  ;;  %v1627_v58 = vpop.f32.mrb[25].mxu1  ;;  %v743_v15 = vadd.f32 %v742_v35, %v741_v28  ;;  %v651_v1 = vsel %vm649_vm2, %v650_v27, %v648_v56  ;;  %v659_v16 = vmul.f32 0.6931472, %v1198_v60  ;;  %vm684_vm5 = vcmp.eq.f32.partialorder %v1593_v14, inf }
 0x117   :  { %v1634_v0 = vpop.f32.mrb[26].mxu0  ;;  %v1636_v54 = vpop.f32.mrb[26].mxu1  ;;  %vm686_vm6 = vcmp.eq.f32.partialorder %v1593_v14, 0.0  ;;  %v641_v6 = vsel %vm640_vm3, %v1553_v49, %v639_v62  ;;  %v687_v29 = vand.u32 2147483648, %v1593_v14  ;;  %1207 = vrsqrt.f32 %v1630_v63 }
 0x118   :  { %v1642_v20 = vpop.f32.mrb[27].mxu0  ;;  %v1644_v3 = vpop.f32.mrb[27].mxu1  ;;  %v746_v31 = vmul.f32 %v1502_v61, %v1502_v61  ;;  %v644_v7 = vsel %vm642_vm4, %v643_v34, %v641_v6  ;;  %v660_v10 = vsub.f32 %v657_v48, %v659_v16  ;;  %vm677_vm7 = vcmp.eq.f32.partialorder %v1595_v17, inf }
 0x119   :  { %1209 = vlog2.f32 %v1630_v63  ;;  %v652_v43 = vsub.f32 %v644_v7, %v651_v1  ;;  %vm679_vm8 = vcmp.eq.f32.partialorder %v1595_v17, 0.0  ;;  %v778_v12 = vmul.f32 %v1520_v25, %v1520_v25 }
 0x11a   :  { %1211 = vrsqrt.f32 %v1632_v57  ;;  %v1200_v44 = vpop.eup %1199  ;;  %v661_v13 = vand.u32 2147483647, %v660_v10  ;;  %v729_v61 = vadd.f32 %v1632_v57, %v692_v53  ;;  %v782_v49 = vmul.f32 %v1522_v26, %v1522_v26 }
 0x11b   :  { %1213 = vlog2.f32 %v1632_v57  ;;  %v1202_v18 = vpop.eup %1201  ;;  %v653_v19 = vmul.f32 %v652_v43, %v652_v43  ;;  %v683_v59 = vmul.f32 %v1200_v44, %v1593_v14  ;;  %v1666_v50 = vmax.f32 %v743_v15, 1e-07 }
 0x11c   :  { %v747_v11 = vadd.f32 %v746_v31, %v745_v41  ;;  %v662_v30 = vadd.f32 %v661_v13, %v625_v47  ;;  %v694_v24 = vmul.f32 0.6931472, %v1202_v18  ;;  %v779_v33 = vmul.f32 %v1529_v32, %v1529_v32 }
 0x11d   :  { %v1668_v27 = vpop.f32.mrb[28].mxu0  ;;  %v1670_v28 = vpop.f32.mrb[28].mxu1  ;;  %v783_v26 = vmul.f32 %v1531_v4, %v1531_v4  ;;  %v654_v56 = vadd.f32 %v653_v19, %v617_v39  ;;  %v685_v34 = vsel %vm684_vm5, %v1593_v14, %v683_v59  ;;  %1215 = vrsqrt.f32 %v1666_v50 }
 0x11e   :  { %v1204_v25 = vpop.eup %1203  ;;  %v1676_v35 = vpop.f32.mrb[29].mxu0  ;;  %v688_v4 = vsel %vm686_vm6, %v687_v29, %v685_v34  ;;  %v680_v48 = vand.u32 2147483648, %v1595_v17  ;;  %vm721_vm9 = vcmp.eq.f32.partialorder %v1630_v63, inf  ;;  %vm723_vm10 = vcmp.eq.f32.partialorder %v1630_v63, 0.0 }
 0x11f   :  { %v1678_v36 = vpop.f32.mrb[29].mxu1  ;;  %v676_v41 = vmul.f32 %v1204_v25, %v1595_v17  ;;  %v1685_v46 = vpop.f32.mrb[30].mxu0  ;;  %1217 = vlog2.f32 %v1666_v50  ;;  %v1702_v15 = vmax.f32 %v747_v11, 1e-07  ;;  %v724_v1 = vand.u32 2147483648, %v1630_v63 }
 0x120   :  { %v1687_v47 = vpop.f32.mrb[30].mxu1  ;;  %v1206_v32 = vpop.eup %1205  ;;  %v780_v16 = vadd.f32 %v779_v33, %v778_v12  ;;  %v784_v6 = vadd.f32 %v783_v26, %v782_v49  ;;  %vm714_vm11 = vcmp.eq.f32.partialorder %v1632_v57, inf  ;;  %vm716_vm12 = vcmp.eq.f32.partialorder %v1632_v57, 0.0 }
 0x121   :  { %v1694_v39 = vpop.f32.mrb[31].mxu0  ;;  %v1696_v53 = vpop.f32.mrb[31].mxu1  ;;  %v678_v60 = vsel %vm677_vm7, %v1595_v17, %v676_v41  ;;  %v696_v62 = vmul.f32 0.6931472, %v1206_v32  ;;  %1219 = vrsqrt.f32 %v1702_v15  ;;  %v717_v44 = vand.u32 2147483648, %v1632_v57 }
 0x122   :  { %v681_v14 = vsel %vm679_vm8, %v680_v48, %v678_v60  ;;  %v1208_v29 = vpop.eup %1207  ;;  %v766_v17 = vadd.f32 %v1702_v15, %v729_v61  ;;  %1221 = vlog2.f32 %v1702_v15  ;;  %v1718_v25 = vmax.f32 %v780_v16, 1e-07 }
 0x123   :  { %v689_v31 = vsub.f32 %v681_v14, %v688_v4  ;;  %v697_v7 = vsub.f32 %v694_v24, %v696_v62  ;;  %v1210_v10 = vpop.eup %1209  ;;  %v720_v43 = vmul.f32 %v1208_v29, %v1630_v63  ;;  %v1720_v24 = vmax.f32 %v784_v6, 1e-07 }
 0x124   :  { %v1212_v13 = vpop.eup %1211  ;;  %v731_v49 = vmul.f32 0.6931472, %v1210_v10  ;;  %vm758_vm13 = vcmp.eq.f32.partialorder %v1666_v50, inf  ;;  %vm760_vm14 = vcmp.eq.f32.partialorder %v1666_v50, 0.0  ;;  %1223 = vrsqrt.f32 %v1718_v25 }
 0x125   :  { %v690_v18 = vmul.f32 %v689_v31, %v689_v31  ;;  %v698_v12 = vand.u32 2147483647, %v697_v7  ;;  %v1214_v19 = vpop.eup %1213  ;;  %v722_v59 = vsel %vm721_vm9, %v1630_v63, %v720_v43  ;;  %v713_v11 = vmul.f32 %v1212_v13, %v1632_v57 }
 0x126   :  { %v725_v61 = vsel %vm723_vm10, %v724_v1, %v722_v59  ;;  %v733_v34 = vmul.f32 0.6931472, %v1214_v19  ;;  %1225 = vlog2.f32 %v1718_v25  ;;  %v815_v60 = vmul.f32 %v1537_v37, %v1537_v37 }
 0x127   :  { %v691_v33 = vadd.f32 %v690_v18, %v654_v56  ;;  %v699_v26 = vadd.f32 %v698_v12, %v662_v30  ;;  %v715_v41 = vsel %vm714_vm11, %v1632_v57, %v713_v11  ;;  %v1216_v32 = vpop.eup %1215  ;;  %v761_v30 = vand.u32 2147483648, %v1666_v50 }
 0x128   :  { %v718_v4 = vsel %vm716_vm12, %v717_v44, %v715_v41  ;;  %v734_v56 = vsub.f32 %v731_v49, %v733_v34  ;;  %v757_v48 = vmul.f32 %v1216_v32, %v1666_v50  ;;  %1227 = vrsqrt.f32 %v1720_v24 }
 0x129   :  { %v726_v63 = vsub.f32 %v718_v4, %v725_v61  ;;  %v1218_v62 = vpop.eup %1217  ;;  %vm751_vm15 = vcmp.eq.f32.partialorder %v1702_v15, inf  ;;  %v754_v57 = vand.u32 2147483648, %v1702_v15  ;;  %v803_v1 = vadd.f32 %v1720_v24, %v766_v17 }
 0x12a   :  { %v735_v14 = vand.u32 2147483647, %v734_v56  ;;  %v759_v6 = vsel %vm758_vm13, %v1666_v50, %v757_v48  ;;  %v768_v29 = vmul.f32 0.6931472, %v1218_v62  ;;  %1229 = vlog2.f32 %v1720_v24 }
 0x12b   :  { %v727_v16 = vmul.f32 %v726_v63, %v726_v63  ;;  %v1220_v31 = vpop.eup %1219  ;;  %v762_v37 = vsel %vm760_vm14, %v761_v30, %v759_v6  ;;  %v819_v10 = vmul.f32 %v1539_v38, %v1539_v38  ;;  %v816_v43 = vmul.f32 %v1544_v40, %v1544_v40 }
 0x12c   :  { %v736_v7 = vadd.f32 %v735_v14, %v699_v26  ;;  %v750_v17 = vmul.f32 %v1220_v31, %v1702_v15  ;;  %v820_v13 = vmul.f32 %v1546_v5, %v1546_v5  ;;  %v852_v18 = vmul.f32 %v1570_v2, %v1570_v2  ;;  %v1222_v12 = vpop.eup %1221 }
 0x12d   :  { %v728_v44 = vadd.f32 %v727_v16, %v691_v33  ;;  %v817_v49 = vadd.f32 %v816_v43, %v815_v60  ;;  %v856_v50 = vmul.f32 %v1572_v21, %v1572_v21  ;;  %v853_v38 = vmul.f32 %v1578_v8, %v1578_v8 }
 0x12e   :  { %v857_v40 = vmul.f32 %v1580_v9, %v1580_v9  ;;  %v752_v19 = vsel %vm751_vm15, %v1702_v15, %v750_v17  ;;  %vm753_vm0 = vcmp.eq.f32.partialorder %v1702_v15, 0.0  ;;  %v770_v5 = vmul.f32 0.6931472, %v1222_v12  ;;  %v1224_v21 = vpop.eup %1223 }
 0x12f   :  { %v821_v59 = vadd.f32 %v820_v13, %v819_v10  ;;  %v755_v2 = vsel %vm753_vm0, %v754_v57, %v752_v19  ;;  %v1766_v11 = vmax.f32 %v817_v49, 1e-07  ;;  %v854_v33 = vadd.f32 %v853_v38, %v852_v18 }
 0x130   :  { %v858_v26 = vadd.f32 %v857_v40, %v856_v50  ;;  %v763_v61 = vsub.f32 %v755_v2, %v762_v37  ;;  %v771_v34 = vsub.f32 %v768_v29, %v770_v5  ;;  %vm795_vm1 = vcmp.eq.f32.partialorder %v1718_v25, inf  ;;  %v1226_v9 = vpop.eup %1225 }
 0x131   :  { %v1769_v8 = vmax.f32 %v821_v59, 1e-07  ;;  %v794_v41 = vmul.f32 %v1224_v21, %v1718_v25  ;;  %vm797_vm2 = vcmp.eq.f32.partialorder %v1718_v25, 0.0  ;;  %v798_v15 = vand.u32 2147483648, %v1718_v25 }
 0x132   :  { %1231 = vrsqrt.f32 %v1766_v11  ;;  %v1228_v32 = vpop.eup %1227  ;;  %v764_v4 = vmul.f32 %v763_v61, %v763_v61  ;;  %v772_v56 = vand.u32 2147483647, %v771_v34  ;;  %vm788_vm3 = vcmp.eq.f32.partialorder %v1720_v24, inf }
 0x133   :  { %v791_v30 = vand.u32 2147483648, %v1720_v24  ;;  %v796_v63 = vsel %vm795_vm1, %v1718_v25, %v794_v41  ;;  %v805_v48 = vmul.f32 0.6931472, %v1226_v9  ;;  %v787_v60 = vmul.f32 %v1228_v32, %v1720_v24 }
 0x134   :  { %1233 = vlog2.f32 %v1766_v11  ;;  %v1230_v62 = vpop.eup %1229  ;;  %v765_v14 = vadd.f32 %v764_v4, %v728_v44  ;;  %v773_v57 = vadd.f32 %v772_v56, %v736_v7  ;;  %v799_v16 = vsel %vm797_vm2, %v798_v15, %v796_v63 }
 0x135   :  { %1235 = vrsqrt.f32 %v1769_v8  ;;  %v789_v6 = vsel %vm788_vm3, %v1720_v24, %v787_v60  ;;  %vm790_vm4 = vcmp.eq.f32.partialorder %v1720_v24, 0.0  ;;  %v807_v29 = vmul.f32 0.6931472, %v1230_v62 }
 0x136   :  { %v889_v31 = vmul.f32 %v1589_v45, %v1589_v45  ;;  %v792_v25 = vsel %vm790_vm4, %v791_v30, %v789_v6  ;;  %v840_v37 = vadd.f32 %v1769_v8, %v803_v1  ;;  %1237 = vlog2.f32 %v1769_v8 }
 0x137   :  { %v1787_v10 = vmax.f32 %v854_v33, 1e-07  ;;  %v800_v43 = vsub.f32 %v792_v25, %v799_v16  ;;  %v808_v7 = vsub.f32 %v805_v48, %v807_v29  ;;  %v1789_v44 = vmax.f32 %v858_v26, 1e-07 }
 0x138   :  { %v890_v17 = vmul.f32 %v1598_v22, %v1598_v22  ;;  %vm832_vm5 = vcmp.eq.f32.partialorder %v1766_v11, inf  ;;  %vm834_vm6 = vcmp.eq.f32.partialorder %v1766_v11, 0.0  ;;  %v893_v45 = vmul.f32 %v1591_v52, %v1591_v52 }
 0x139   :  { %1239 = vrsqrt.f32 %v1787_v10  ;;  %v801_v24 = vmul.f32 %v800_v43, %v800_v43  ;;  %v809_v1 = vand.u32 2147483647, %v808_v7  ;;  %v835_v13 = vand.u32 2147483648, %v1766_v11 }
 0x13a   :  { %1241 = vlog2.f32 %v1787_v10  ;;  %vm825_vm7 = vcmp.eq.f32.partialorder %v1769_v8, inf  ;;  %vm827_vm8 = vcmp.eq.f32.partialorder %v1769_v8, 0.0  ;;  %v877_v22 = vadd.f32 %v1789_v44, %v840_v37 }
 0x13b   :  { %1243 = vrsqrt.f32 %v1789_v44  ;;  %v802_v12 = vadd.f32 %v801_v24, %v765_v14  ;;  %v810_v49 = vadd.f32 %v809_v1, %v773_v57  ;;  %v891_v52 = vadd.f32 %v890_v17, %v889_v31 }
 0x13c   :  { %v1232_v18 = vpop.eup %1231  ;;  %1245 = vlog2.f32 %v1789_v44  ;;  %v828_v38 = vand.u32 2147483648, %v1769_v8  ;;  %v894_v40 = vmul.f32 %v1600_v23, %v1600_v23  ;;  %v926_v19 = vmul.f32 %v1619_v42, %v1619_v42 }
 0x13d   :  { %v831_v50 = vmul.f32 %v1232_v18, %v1766_v11  ;;  %v1811_v59 = vmax.f32 %v891_v52, 1e-07  ;;  %v930_v2 = vmul.f32 %v1621_v51, %v1621_v51  ;;  %v927_v33 = vmul.f32 %v1625_v55, %v1625_v55 }
 0x13e   :  { %v1234_v5 = vpop.eup %1233  ;;  %v931_v26 = vmul.f32 %v1627_v58, %v1627_v58  ;;  %vm869_vm9 = vcmp.eq.f32.partialorder %v1787_v10, inf  ;;  %vm871_vm10 = vcmp.eq.f32.partialorder %v1787_v10, 0.0  ;;  %v895_v42 = vadd.f32 %v894_v40, %v893_v45 }
 0x13f   :  { %v1236_v21 = vpop.eup %1235  ;;  %v833_v23 = vsel %vm832_vm5, %v1766_v11, %v831_v50  ;;  %v842_v61 = vmul.f32 0.6931472, %v1234_v5  ;;  %v872_v51 = vand.u32 2147483648, %v1787_v10  ;;  %1247 = vrsqrt.f32 %v1811_v59 }
 0x140   :  { %v824_v34 = vmul.f32 %v1236_v21, %v1769_v8  ;;  %v1238_v55 = vpop.eup %1237  ;;  %v836_v58 = vsel %vm834_vm6, %v835_v13, %v833_v23  ;;  %vm862_vm11 = vcmp.eq.f32.partialorder %v1789_v44, inf  ;;  %1249 = vlog2.f32 %v1811_v59 }
 0x141   :  { %v1831_v9 = vmax.f32 %v895_v42, 1e-07  ;;  %v844_v15 = vmul.f32 0.6931472, %v1238_v55  ;;  %v928_v32 = vadd.f32 %v927_v33, %v926_v19  ;;  %v932_v4 = vadd.f32 %v931_v26, %v930_v2 }
 0x142   :  { %v826_v41 = vsel %vm825_vm7, %v1769_v8, %v824_v34  ;;  %vm864_vm12 = vcmp.eq.f32.partialorder %v1789_v44, 0.0  ;;  %v865_v11 = vand.u32 2147483648, %v1789_v44  ;;  %v963_v14 = vmul.f32 %v1634_v0, %v1634_v0 }
 0x143   :  { %v1240_v56 = vpop.eup %1239  ;;  %v829_v30 = vsel %vm827_vm8, %v828_v38, %v826_v41  ;;  %1251 = vrsqrt.f32 %v1831_v9  ;;  %v845_v60 = vsub.f32 %v842_v61, %v844_v15  ;;  %v914_v6 = vadd.f32 %v1831_v9, %v877_v22 }
 0x144   :  { %v1242_v63 = vpop.eup %1241  ;;  %v837_v48 = vsub.f32 %v829_v30, %v836_v58  ;;  %v868_v62 = vmul.f32 %v1240_v56, %v1787_v10  ;;  %1253 = vlog2.f32 %v1831_v9  ;;  %v1846_v8 = vmax.f32 %v928_v32, 1e-07 }
 0x145   :  { %v1244_v57 = vpop.eup %1243  ;;  %v879_v16 = vmul.f32 0.6931472, %v1242_v63  ;;  %v846_v25 = vand.u32 2147483647, %v845_v60  ;;  %v967_v17 = vmul.f32 %v1636_v54, %v1636_v54  ;;  %vm906_vm13 = vcmp.eq.f32.partialorder %v1811_v59, inf }
 0x146   :  { %v1246_v29 = vpop.eup %1245  ;;  %v838_v31 = vmul.f32 %v837_v48, %v837_v48  ;;  %v870_v37 = vsel %vm869_vm9, %v1787_v10, %v868_v62  ;;  %v861_v43 = vmul.f32 %v1244_v57, %v1789_v44  ;;  %1255 = vrsqrt.f32 %v1846_v8 }
 0x147   :  { %v873_v0 = vsel %vm871_vm10, %v872_v51, %v870_v37  ;;  %v881_v7 = vmul.f32 0.6931472, %v1246_v29  ;;  %v847_v24 = vadd.f32 %v846_v25, %v810_v49  ;;  %vm908_vm14 = vcmp.eq.f32.partialorder %v1811_v59, 0.0 }
 0x148   :  { %v839_v45 = vadd.f32 %v838_v31, %v802_v12  ;;  %v863_v1 = vsel %vm862_vm11, %v1789_v44, %v861_v43  ;;  %v909_v10 = vand.u32 2147483648, %v1811_v59  ;;  %vm899_vm15 = vcmp.eq.f32.partialorder %v1831_v9, inf }
 0x149   :  { %v866_v13 = vsel %vm864_vm12, %v865_v11, %v863_v1  ;;  %v882_v22 = vsub.f32 %v879_v16, %v881_v7  ;;  %v1248_v18 = vpop.eup %1247  ;;  %1257 = vlog2.f32 %v1846_v8  ;;  %v1867_v54 = vmax.f32 %v932_v4, 1e-07 }
 0x14a   :  { %v874_v52 = vsub.f32 %v866_v13, %v873_v0  ;;  %v1250_v12 = vpop.eup %1249  ;;  %v905_v50 = vmul.f32 %v1248_v18, %v1811_v59  ;;  %v964_v44 = vmul.f32 %v1642_v20, %v1642_v20  ;;  %v968_v38 = vmul.f32 %v1644_v3, %v1644_v3 }
 0x14b   :  { %v883_v49 = vand.u32 2147483647, %v882_v22  ;;  %v902_v19 = vand.u32 2147483648, %v1831_v9  ;;  %1259 = vrsqrt.f32 %v1867_v54  ;;  %v1000_v5 = vmul.f32 %v1668_v27, %v1668_v27 }
 0x14c   :  { %v875_v40 = vmul.f32 %v874_v52, %v874_v52  ;;  %v907_v26 = vsel %vm906_vm13, %v1811_v59, %v905_v50  ;;  %v916_v21 = vmul.f32 0.6931472, %v1250_v12  ;;  %v1004_v20 = vmul.f32 %v1670_v28, %v1670_v28 }
 0x14d   :  { %v1252_v2 = vpop.eup %1251  ;;  %v884_v33 = vadd.f32 %v883_v49, %v847_v24  ;;  %v910_v3 = vsel %vm908_vm14, %v909_v10, %v907_v26  ;;  %v951_v61 = vadd.f32 %v1867_v54, %v914_v6  ;;  %1261 = vlog2.f32 %v1867_v54 }
 0x14e   :  { %v876_v23 = vadd.f32 %v875_v40, %v839_v45  ;;  %v898_v42 = vmul.f32 %v1252_v2, %v1831_v9  ;;  %v1254_v34 = vpop.eup %1253  ;;  %v965_v27 = vadd.f32 %v964_v44, %v963_v14  ;;  %v969_v51 = vadd.f32 %v968_v38, %v967_v17 }
 0x14f   :  { %v1001_v55 = vmul.f32 %v1676_v35, %v1676_v35  ;;  %vm901_vm0 = vcmp.eq.f32.partialorder %v1831_v9, 0.0  ;;  %v918_v59 = vmul.f32 0.6931472, %v1254_v34  ;;  %v1005_v58 = vmul.f32 %v1678_v36, %v1678_v36 }
 0x150   :  { %v900_v28 = vsel %vm899_vm15, %v1831_v9, %v898_v42  ;;  %v1256_v41 = vpop.eup %1255  ;;  %v1896_v32 = vmax.f32 %v965_v27, 1e-07  ;;  %v1898_v4 = vmax.f32 %v969_v51, 1e-07  ;;  %vm943_vm1 = vcmp.eq.f32.partialorder %v1846_v8, inf }
 0x151   :  { %v903_v15 = vsel %vm901_vm0, %v902_v19, %v900_v28  ;;  %v1002_v56 = vadd.f32 %v1001_v55, %v1000_v5  ;;  %v919_v11 = vsub.f32 %v916_v21, %v918_v59  ;;  %v942_v35 = vmul.f32 %v1256_v41, %v1846_v8 }
 0x152   :  { %v911_v30 = vsub.f32 %v903_v15, %v910_v3  ;;  %v1006_v63 = vadd.f32 %v1005_v58, %v1004_v20  ;;  %vm945_vm2 = vcmp.eq.f32.partialorder %v1846_v8, 0.0  ;;  %1263 = vrsqrt.f32 %v1896_v32 }
 0x153   :  { %v1258_v9 = vpop.eup %1257  ;;  %v920_v48 = vand.u32 2147483647, %v919_v11  ;;  %v946_v60 = vand.u32 2147483648, %v1846_v8  ;;  %vm936_vm3 = vcmp.eq.f32.partialorder %v1867_v54, inf  ;;  %v944_v62 = vsel %vm943_vm1, %v1846_v8, %v942_v35 }
 0x154   :  { %v912_v36 = vmul.f32 %v911_v30, %v911_v30  ;;  %vm938_vm4 = vcmp.eq.f32.partialorder %v1867_v54, 0.0  ;;  %v939_v14 = vand.u32 2147483648, %v1867_v54  ;;  %1265 = vlog2.f32 %v1896_v32 }
 0x155   :  { %v1260_v57 = vpop.eup %1259  ;;  %v921_v6 = vadd.f32 %v920_v48, %v884_v33  ;;  %1267 = vrsqrt.f32 %v1898_v4  ;;  %v1037_v29 = vmul.f32 %v1685_v46, %v1685_v46  ;;  %v988_v25 = vadd.f32 %v1898_v4, %v951_v61 }
 0x156   :  { %v913_v16 = vadd.f32 %v912_v36, %v876_v23  ;;  %v935_v31 = vmul.f32 %v1260_v57, %v1867_v54  ;;  %1269 = vlog2.f32 %v1898_v4  ;;  %v1916_v37 = vmax.f32 %v1002_v56, 1e-07 }
 0x157   :  { %v947_v43 = vsel %vm945_vm2, %v946_v60, %v944_v62  ;;  %v953_v0 = vmul.f32 0.6931472, %v1258_v9  ;;  %v1920_v7 = vmax.f32 %v1006_v63, 1e-07  ;;  %v1041_v17 = vmul.f32 %v1687_v47, %v1687_v47  ;;  %v1262_v45 = vpop.eup %1261 }
 0x158   :  { %v937_v46 = vsel %vm936_vm3, %v1867_v54, %v935_v31  ;;  %1271 = vrsqrt.f32 %v1916_v37  ;;  %v1038_v24 = vmul.f32 %v1694_v39, %v1694_v39  ;;  %v1042_v8 = vmul.f32 %v1696_v53, %v1696_v53 }
 0x159   :  { %v940_v1 = vsel %vm938_vm4, %v939_v14, %v937_v46  ;;  %v955_v13 = vmul.f32 0.6931472, %v1262_v45  ;;  %1273 = vlog2.f32 %v1916_v37  ;;  %v1025_v10 = vadd.f32 %v1920_v7, %v988_v25 }
 0x15a   :  { %v948_v47 = vsub.f32 %v940_v1, %v947_v43  ;;  %1275 = vrsqrt.f32 %v1920_v7  ;;  %v1039_v39 = vadd.f32 %v1038_v24, %v1037_v29  ;;  %v1043_v12 = vadd.f32 %v1042_v8, %v1041_v17 }
 0x15b   :  { %v956_v22 = vsub.f32 %v953_v0, %v955_v13  ;;  %1277 = vlog2.f32 %v1920_v7  ;;  %vm980_vm5 = vcmp.eq.f32.partialorder %v1896_v32, inf  ;;  %vm982_vm6 = vcmp.eq.f32.partialorder %v1896_v32, 0.0 }
 0x15c   :  { %v1264_v18 = vpop.eup %1263  ;;  %v949_v52 = vmul.f32 %v948_v47, %v948_v47  ;;  %v1941_v44 = vmax.f32 %v1039_v39, 1e-07  ;;  %v1943_v38 = vmax.f32 %v1043_v12, 1e-07  ;;  %v983_v2 = vand.u32 2147483648, %v1896_v32 }
 0x15d   :  { %v957_v49 = vand.u32 2147483647, %v956_v22  ;;  %v979_v53 = vmul.f32 %v1264_v18, %v1896_v32  ;;  %vm973_vm7 = vcmp.eq.f32.partialorder %v1898_v4, inf  ;;  %vm975_vm8 = vcmp.eq.f32.partialorder %v1898_v4, 0.0 }
 0x15e   :  { %v1266_v54 = vpop.eup %1265  ;;  %v950_v50 = vadd.f32 %v949_v52, %v913_v16  ;;  %1279 = vrsqrt.f32 %v1941_v44  ;;  %v976_v23 = vand.u32 2147483648, %v1898_v4  ;;  %vm1017_vm9 = vcmp.eq.f32.partialorder %v1916_v37, inf }
 0x15f   :  { %v1268_v40 = vpop.eup %1267  ;;  %v958_v19 = vadd.f32 %v957_v49, %v921_v6  ;;  %v981_v5 = vsel %vm980_vm5, %v1896_v32, %v979_v53  ;;  %v990_v33 = vmul.f32 0.6931472, %v1266_v54  ;;  %1281 = vlog2.f32 %v1941_v44 }
 0x160   :  { %v1270_v26 = vpop.eup %1269  ;;  %v972_v21 = vmul.f32 %v1268_v40, %v1898_v4  ;;  %v984_v20 = vsel %vm982_vm6, %v983_v2, %v981_v5  ;;  %vm1019_vm10 = vcmp.eq.f32.partialorder %v1916_v37, 0.0  ;;  %1283 = vrsqrt.f32 %v1943_v38 }
 0x161   :  { %v992_v3 = vmul.f32 0.6931472, %v1270_v26  ;;  %v1020_v28 = vand.u32 2147483648, %v1916_v37  ;;  %v1062_v15 = vadd.f32 %v1943_v38, %v1025_v10  ;;  %1285 = vlog2.f32 %v1943_v38 }
 0x162   :  { %v1272_v42 = vpop.eup %1271  ;;  %v974_v61 = vsel %vm973_vm7, %v1898_v4, %v972_v21  ;;  %vm1010_vm11 = vcmp.eq.f32.partialorder %v1920_v7, inf  ;;  %v1013_v63 = vand.u32 2147483648, %v1920_v7  ;;  %vm1012_vm12 = vcmp.eq.f32.partialorder %v1920_v7, 0.0 }
 0x163   :  { %v1274_v34 = vpop.eup %1273  ;;  %v977_v27 = vsel %vm975_vm8, %v976_v23, %v974_v61  ;;  %v993_v51 = vsub.f32 %v990_v33, %v992_v3  ;;  %v1016_v55 = vmul.f32 %v1272_v42, %v1916_v37  ;;  %1120 = vst [vmem:[%s1992_s2 + $0x8] sm:$0xff] %v1062_v15  ;;  %vm1054_vm13 = vcmp.eq.f32.partialorder %v1941_v44, inf }
 0x164   :  { %v1276_v59 = vpop.eup %1275  ;;  %v985_v58 = vsub.f32 %v977_v27, %v984_v20  ;;  %v1027_v41 = vmul.f32 0.6931472, %v1274_v34  ;;  %vm1056_vm14 = vcmp.eq.f32.partialorder %v1941_v44, 0.0  ;;  %v1057_v0 = vand.u32 2147483648, %v1941_v44 }
 0x165   :  { %v1278_v32 = vpop.eup %1277  ;;  %v994_v4 = vand.u32 2147483647, %v993_v51  ;;  %v1018_v56 = vsel %vm1017_vm9, %v1916_v37, %v1016_v55  ;;  %v1009_v30 = vmul.f32 %v1276_v59, %v1920_v7  ;;  %vm1047_vm15 = vcmp.eq.f32.partialorder %v1943_v38, inf }
 0x166   :  { %v986_v11 = vmul.f32 %v985_v58, %v985_v58  ;;  %v1021_v35 = vsel %vm1019_vm10, %v1020_v28, %v1018_v56  ;;  %v1029_v9 = vmul.f32 0.6931472, %v1278_v32  ;;  %v1050_v1 = vand.u32 2147483648, %v1943_v38 }
 0x167   :  { %v995_v36 = vadd.f32 %v994_v4, %v958_v19  ;;  %v1011_v48 = vsel %vm1010_vm11, %v1920_v7, %v1009_v30  ;;  %vm1049_vm0 = vcmp.eq.f32.partialorder %v1943_v38, 0.0 }
 0x168   :  { %v987_v60 = vadd.f32 %v986_v11, %v950_v50  ;;  %v1014_v62 = vsel %vm1012_vm12, %v1013_v63, %v1011_v48  ;;  %v1030_v14 = vsub.f32 %v1027_v41, %v1029_v9  ;;  %v1280_v16 = vpop.eup %1279 }
 0x169   :  { %v1022_v57 = vsub.f32 %v1014_v62, %v1021_v35  ;;  %v1282_v29 = vpop.eup %1281  ;;  %v1053_v25 = vmul.f32 %v1280_v16, %v1941_v44 }
 0x16a   :  { %v1031_v6 = vand.u32 2147483647, %v1030_v14  ;;  %v1284_v37 = vpop.eup %1283  ;;  %v1064_v45 = vmul.f32 0.6931472, %v1282_v29 }
 0x16b   :  { %v1023_v31 = vmul.f32 %v1022_v57, %v1022_v57  ;;  %v1055_v7 = vsel %vm1054_vm13, %v1941_v44, %v1053_v25  ;;  %v1046_v46 = vmul.f32 %v1284_v37, %v1943_v38  ;;  %v1286_v24 = vpop.eup %1285 }
 0x16c   :  { %v1032_v43 = vadd.f32 %v1031_v6, %v995_v36  ;;  %v1058_v8 = vsel %vm1056_vm14, %v1057_v0, %v1055_v7  ;;  %v1066_v47 = vmul.f32 0.6931472, %v1286_v24 }
 0x16d   :  { %v1024_v17 = vadd.f32 %v1023_v31, %v987_v60  ;;  %v1048_v13 = vsel %vm1047_vm15, %v1943_v38, %v1046_v46 }
 0x16e   :  { %v1051_v22 = vsel %vm1049_vm0, %v1050_v1, %v1048_v13  ;;  %v1067_v18 = vsub.f32 %v1064_v45, %v1066_v47 }
 0x16f   :  { %v1059_v10 = vsub.f32 %v1051_v22, %v1058_v8 }
 0x170   :  { %v1068_v39 = vand.u32 2147483647, %v1067_v18 }
 0x171   :  { %v1060_v52 = vmul.f32 %v1059_v10, %v1059_v10 }
 0x172   :  { %v1069_v49 = vadd.f32 %v1068_v39, %v1032_v43 }
 0x173   :  { %v1061_v12 = vadd.f32 %v1060_v52, %v1024_v17 }
 0x174   :  { %v1073_v53 = vmul.f32 0.5, %v1069_v49 }
 0x175   :  { %1070 = vst [vmem:[%s1992_s2] sm:$0xff] %v1061_v12 }
 0x176   :  { %1121 = vst [vmem:[%s1992_s2 + $0x10] sm:$0xff] %v1073_v53 }

</bundles_post_ra>
